<compile_context>
chip_gen: v5e
topology: v5e:2x2
jax: 0.10.0
libtpu: 0.0.40
codegen_flags: <defaults>
</compile_context>

<pallas_src>
import math
import functools

import jax
import jax.numpy as jnp
from jax.experimental import pallas as pl
from jax.experimental.pallas import tpu as pltpu


# ----------------------------- kernel helpers -----------------------------

def _layernorm(x, g, b, eps=1e-6):
    mu = jnp.mean(x, axis=-1, keepdims=True)
    var = jnp.mean((x - mu) ** 2, axis=-1, keepdims=True)
    return (x - mu) * jax.lax.rsqrt(var + eps) * g + b


def _mha(xq, xkv, bias, wq, bq, wk, bk, wv, bv, wo, bo,
         *, block_b, sq, sk, num_heads, head_dim):
    """Multi-head attention on batch-folded activations.

    xq:   (block_b*sq, E) f32     xkv: (block_b*sk, E) f32
    bias: (block_b, sq, sk) f32 additive mask bias (0 keep / -1e30 drop)
    w*:   (in, out) bf16 weight refs (wq/bq carry the 1/sqrt(head_dim) scale)
    b*:   (1, out)  f32 bias refs
    """
    emb = num_heads * head_dim
    bf16, f32 = jnp.bfloat16, jnp.float32

    # Full-width projections on the MXU (bf16 operands, f32 accumulation).
    q = jnp.dot(xq.astype(bf16), wq[...], preferred_element_type=f32) + bq[...]
    k = jnp.dot(xkv.astype(bf16), wk[...], preferred_element_type=f32) + bk[...]
    v = jnp.dot(xkv.astype(bf16), wv[...], preferred_element_type=f32) + bv[...]

    outs = []
    for b in range(block_b):            # static; block_b == 1 at the test shapes
        qh = pltpu.einshape(
            "shd->hsd", q[b * sq:(b + 1) * sq].reshape(sq, num_heads, head_dim))
        kh = pltpu.einshape(
            "shd->hsd", k[b * sk:(b + 1) * sk].reshape(sk, num_heads, head_dim))
        vh = pltpu.einshape(
            "shd->hsd", v[b * sk:(b + 1) * sk].reshape(sk, num_heads, head_dim))

        # All heads in one batched matmul: (H,sq,hd) x (H,sk,hd) -> (H,sq,sk)
        s = jnp.einsum("hqd,hkd->hqk", qh.astype(bf16), kh.astype(bf16),
                       preferred_element_type=f32)
        s = s + bias[b][None, :, :]                       # additive mask bias
        s = s - jnp.max(s, axis=-1, keepdims=True)
        p = jnp.exp(s)
        p = p * pl.reciprocal(jnp.sum(p, axis=-1, keepdims=True), approx=True)

        ah = jnp.einsum("hqk,hkd->hqd", p.astype(bf16), vh.astype(bf16),
                        preferred_element_type=f32)       # (H, sq, hd)
        outs.append(pltpu.einshape("hsd->shd", ah).reshape(sq, emb))

    attn = outs[0] if block_b == 1 else jnp.concatenate(outs, axis=0)
    return jnp.dot(attn.astype(bf16), wo[...], preferred_element_type=f32) + bo[...]


# ------------------------------- the kernel -------------------------------

def decoder_block_kernel(
    x_ref, enc_ref, tbias_ref, sbias_ref,
    swq, sbq, swk, sbk, swv, sbv, swo, sbo,          # self-attention
    cwq, cbq, cwk, cbk, cwv, cbv, cwo, cbo,          # cross-attention
    g1, bn1, g2, bn2, g3, bn3,                       # layernorms
    w1, bf1, w2, bf2,                                # feed-forward
    out_ref,
    *, num_heads, head_dim, block_b,
):
    bf16, f32 = jnp.bfloat16, jnp.float32
    _, sq, emb = x_ref.shape
    sk = enc_ref.shape[1]

    # Fold batch rows into the matmul M dimension.
    x = x_ref[...].reshape(block_b * sq, emb)
    enc = enc_ref[...].reshape(block_b * sk, emb)
    tbias = tbias_ref[...]            # (block_b, sq, sq)
    sbias = sbias_ref[...]            # (block_b, sq, sk)

    mha = functools.partial(_mha, block_b=block_b, num_heads=num_heads,
                            head_dim=head_dim)

    # self-attention + (dropout = identity) + residual + norm1
    sa = mha(x, x, tbias, swq, sbq, swk, sbk, swv, sbv, swo, sbo, sq=sq, sk=sq)
    h1 = _layernorm(x + sa, g1[...], bn1[...])

    # cross-attention + residual + norm2
    ca = mha(h1, enc, sbias, cwq, cbq, cwk, cbk, cwv, cbv, cwo, cbo, sq=sq, sk=sk)
    h2 = _layernorm(h1 + ca, g2[...], bn2[...])

    # FFN (Linear -> ReLU -> Linear) + residual + norm3
    # TODO(synk): at production forward_dim, K-tile the FFN over F to bound the
    # VMEM working set on v7x (64 MiB) instead of materializing the full (M, F).
    ff = jnp.dot(h2.astype(bf16), w1[...], preferred_element_type=f32) + bf1[...]
    ff = jnp.maximum(ff, 0.0)
    ff = jnp.dot(ff.astype(bf16), w2[...], preferred_element_type=f32) + bf2[...]
    y = _layernorm(h2 + ff, g3[...], bn3[...])

    out_ref[...] = y.reshape(block_b, sq, emb)


# ------------------------- host-side param prep ---------------------------

def prepare_params(params, num_heads):
    """PyTorch-convention f32 params -> kernel layout.

    Weights are transposed to (in, out) and cast to bf16 (MXU operands);
    the 1/sqrt(head_dim) attention scale is folded into the Q projections.
    Biases / LayerNorm params stay f32.
    """
    (swq, sbq, swk, sbk, swv, sbv, swo, sbo,
     cwq, cbq, cwk, cbk, cwv, cbv, cwo, cbo,
     g1, bn1, g2, bn2, g3, bn3,
     w1, bf1, w2, bf2) = params
    emb = swq.shape[1]
    scale = 1.0 / math.sqrt(emb // num_heads)

    def wt(w):  # (out, in) -> (in, out), bf16
        return w.T.astype(jnp.bfloat16)

    return [
        (swq.T * scale).astype(jnp.bfloat16), (sbq * scale).astype(jnp.float32),
        wt(swk), sbk, wt(swv), sbv, wt(swo), sbo,
        (cwq.T * scale).astype(jnp.bfloat16), (cbq * scale).astype(jnp.float32),
        wt(cwk), cbk, wt(cwv), cbv, wt(cwo), cbo,
        g1, bn1, g2, bn2, g3, bn3,
        wt(w1), bf1, wt(w2), bf2,
    ]


def _mask_to_bias(mask):
    return jnp.where(mask == 0, -1e30, 0.0).astype(jnp.float32)


# ------------------------------ host wrapper ------------------------------

def decoder_block(x, enc_output, src_mask, tgt_mask, params, num_heads,
                  block_b=None):
    B, Sq, E = x.shape
    Sk = enc_output.shape[1]
    head_dim = E // num_heads

    if block_b is None:
        # Fold batch rows into M, but keep >= 2 parallel grid blocks (v7x megacore).
        block_b = B // 2 if (B >= 2 and B % 2 == 0) else 1
    assert B % block_b == 0
    grid_b = B // block_b

    # Masks -> additive bias on the host (no in-kernel compare+select, no -inf NaN).
    tgt_bias = _mask_to_bias(tgt_mask)    # (B, Sq, Sq)
    src_bias = _mask_to_bias(src_mask)    # (B, Sq, Sk)

    proc = prepare_params(params, num_heads)

    def full_spec(arr):
        # un-tiled parameter: constant index_map -> fetched once, resident in VMEM
        return pl.BlockSpec(arr.shape, lambda b, n=arr.ndim: (0,) * n)

    in_specs = [
        pl.BlockSpec((block_b, Sq, E), lambda b: (b, 0, 0)),    # x
        pl.BlockSpec((block_b, Sk, E), lambda b: (b, 0, 0)),    # enc_output
        pl.BlockSpec((block_b, Sq, Sq), lambda b: (b, 0, 0)),   # tgt bias
        pl.BlockSpec((block_b, Sq, Sk), lambda b: (b, 0, 0)),   # src bias
    ] + [full_spec(p) for p in proc]

    kernel = functools.partial(decoder_block_kernel, num_heads=num_heads,
                               head_dim=head_dim, block_b=block_b)

    return pl.pallas_call(
        kernel,
        out_shape=jax.ShapeDtypeStruct((B, Sq, E), jnp.float32),
        grid_spec=pltpu.PrefetchScalarGridSpec(
            num_scalar_prefetch=0,
            grid=(grid_b,),
            in_specs=in_specs,
            out_specs=pl.BlockSpec((block_b, Sq, E), lambda b: (b, 0, 0)),
        ),
        compiler_params=pltpu.CompilerParams(
            dimension_semantics=("parallel",),
            vmem_limit_bytes=32 * 1024 * 1024,
        ),
    )(x, enc_output, tgt_bias, src_bias, *proc)


# --------------------------- parameter creation ----------------------------

def init_params(key, emb_dim, forward_dim):
    def linear(k, in_f, out_f):
        kw, kb = jax.random.split(k)
        bound = 1.0 / math.sqrt(in_f)
        w = jax.random.uniform(kw, (out_f, in_f), jnp.float32, -bound, bound)
        b = jax.random.uniform(kb, (1, out_f), jnp.float32, -bound, bound)
        return w, b

    keys = jax.random.split(key, 10)
    p = []
    for i in range(4):                       # self-attn q/k/v/out
        p.extend(linear(keys[i], emb_dim, emb_dim))
    for i in range(4):                       # cross-attn q/k/v/out
        p.extend(linear(keys[4 + i], emb_dim, emb_dim))
    for _ in range(3):                       # layernorm 1/2/3
        p.append(jnp.ones((1, emb_dim), jnp.float32))
        p.append(jnp.zeros((1, emb_dim), jnp.float32))
    p.extend(linear(keys[8], emb_dim, forward_dim))
    p.extend(linear(keys[9], forward_dim, emb_dim))
    return p


# ------------------------- pure-JAX reference check ------------------------
# Mirrors the PyTorch forward (split/merge heads, softmax, residual+LN) using the
# same host-prepared params and the same bf16 MXU-operand rounding as the kernel.

def _ref_mha(xq, xkv, wq_t, bq, wk_t, bk, wv_t, bv, wo_t, bo, bias, num_heads):
    B, Sq, E = xq.shape
    Sk = xkv.shape[1]
    hd = E // num_heads
    bf16, f32 = jnp.bfloat16, jnp.float32

    q = jnp.einsum("bse,ef->bsf", xq.astype(bf16), wq_t, preferred_element_type=f32) + bq
    k = jnp.einsum("bse,ef->bsf", xkv.astype(bf16), wk_t, preferred_element_type=f32) + bk
    v = jnp.einsum("bse,ef->bsf", xkv.astype(bf16), wv_t, preferred_element_type=f32) + bv

    def split(t, S):
        return t.reshape(B, S, num_heads, hd).transpose(0, 2, 1, 3)

    qh, kh, vh = split(q, Sq).astype(bf16), split(k, Sk).astype(bf16), split(v, Sk).astype(bf16)
    s = jnp.einsum("bhqd,bhkd->bhqk", qh, kh, preferred_element_type=f32)
    s = s + bias[:, None, :, :]
    p = jax.nn.softmax(s, axis=-1)
    a = jnp.einsum("bhqk,bhkd->bhqd", p.astype(bf16), vh, preferred_element_type=f32)
    a = a.transpose(0, 2, 1, 3).reshape(B, Sq, E)
    return jnp.einsum("bse,ef->bsf", a.astype(bf16), wo_t, preferred_element_type=f32) + bo


def _ref_ln(x, g, b, eps=1e-6):
    mu = x.mean(-1, keepdims=True)
    var = ((x - mu) ** 2).mean(-1, keepdims=True)
    return (x - mu) / jnp.sqrt(var + eps) * g + b


def reference(x, enc, src_bias, tgt_bias, proc, num_heads):
    (swq, sbq, swk, sbk, swv, sbv, swo, sbo,
     cwq, cbq, cwk, cbk, cwv, cbv, cwo, cbo,
     g1, bn1, g2, bn2, g3, bn3,
     w1, bf1, w2, bf2) = proc
    bf16, f32 = jnp.bfloat16, jnp.float32
    sa = _ref_mha(x, x, swq, sbq, swk, sbk, swv, sbv, swo, sbo, tgt_bias, num_heads)
    h1 = _ref_ln(x + sa, g1, bn1)
    ca = _ref_mha(h1, enc, cwq, cbq, cwk, cbk, cwv, cbv, cwo, cbo, src_bias, num_heads)
    h2 = _ref_ln(h1 + ca, g2, bn2)
    ff = jnp.einsum("bse,ef->bsf", h2.astype(bf16), w1, preferred_element_type=f32) + bf1
    ff = jnp.maximum(ff, 0.0)
    ff = jnp.einsum("bsf,fe->bse", ff.astype(bf16), w2, preferred_element_type=f32) + bf2
    return _ref_ln(h2 + ff, g3, bn3)


# ----------------------------------- main -----------------------------------

if __name__ == "__main__":
    B, Sq, Sk, E, H, F = 2, 8, 8, 32, 4, 64
    key = jax.random.PRNGKey(0)
    kx, kenc, kp = jax.random.split(key, 3)

    x = jax.random.normal(kx, (B, Sq, E), jnp.float32)
    enc_output = jax.random.normal(kenc, (B, Sk, E), jnp.float32)
    # tgt_mask: causal (B, Sq, Sq); src_mask: all visible (B, Sq, Sk)
    tgt_mask = jnp.broadcast_to(jnp.tril(jnp.ones((Sq, Sq), jnp.float32)), (B, Sq, Sq))
    src_mask = jnp.ones((B, Sq, Sk), jnp.float32)

    params = init_params(kp, E, F)

    out = decoder_block(x, enc_output, src_mask, tgt_mask, params, H)
    out = jax.block_until_ready(out)

    proc = prepare_params(params, H)
    ref = reference(x, enc_output, _mask_to_bias(src_mask), _mask_to_bias(tgt_mask),
                    proc, H)

    assert out.shape == (B, Sq, E)
    max_err = float(jnp.max(jnp.abs(out - ref)))
    # bf16 MXU operands + approximate softmax reciprocal -> small numeric slack.
    assert jnp.allclose(out, ref, atol=2e-2, rtol=2e-2), \
        f"mismatch vs reference (max abs err {max_err})"

    print("KERNEL_OK")
</pallas_src>

<mosaic_0001>
module attributes {stable_mosaic.version = 11 : i64} {
  func.func @decoder_block_kernel(%arg0: i32, %arg1: memref<1x8x32xf32, #tpu.memory_space<vmem>>, %arg2: memref<1x8x32xf32, #tpu.memory_space<vmem>>, %arg3: memref<1x8x8xf32, #tpu.memory_space<vmem>>, %arg4: memref<1x8x8xf32, #tpu.memory_space<vmem>>, %arg5: memref<32x32xbf16, #tpu.memory_space<vmem>>, %arg6: memref<1x32xf32, #tpu.memory_space<vmem>>, %arg7: memref<32x32xbf16, #tpu.memory_space<vmem>>, %arg8: memref<1x32xf32, #tpu.memory_space<vmem>>, %arg9: memref<32x32xbf16, #tpu.memory_space<vmem>>, %arg10: memref<1x32xf32, #tpu.memory_space<vmem>>, %arg11: memref<32x32xbf16, #tpu.memory_space<vmem>>, %arg12: memref<1x32xf32, #tpu.memory_space<vmem>>, %arg13: memref<32x32xbf16, #tpu.memory_space<vmem>>, %arg14: memref<1x32xf32, #tpu.memory_space<vmem>>, %arg15: memref<32x32xbf16, #tpu.memory_space<vmem>>, %arg16: memref<1x32xf32, #tpu.memory_space<vmem>>, %arg17: memref<32x32xbf16, #tpu.memory_space<vmem>>, %arg18: memref<1x32xf32, #tpu.memory_space<vmem>>, %arg19: memref<32x32xbf16, #tpu.memory_space<vmem>>, %arg20: memref<1x32xf32, #tpu.memory_space<vmem>>, %arg21: memref<1x32xf32, #tpu.memory_space<vmem>>, %arg22: memref<1x32xf32, #tpu.memory_space<vmem>>, %arg23: memref<1x32xf32, #tpu.memory_space<vmem>>, %arg24: memref<1x32xf32, #tpu.memory_space<vmem>>, %arg25: memref<1x32xf32, #tpu.memory_space<vmem>>, %arg26: memref<1x32xf32, #tpu.memory_space<vmem>>, %arg27: memref<32x64xbf16, #tpu.memory_space<vmem>>, %arg28: memref<1x64xf32, #tpu.memory_space<vmem>>, %arg29: memref<64x32xbf16, #tpu.memory_space<vmem>>, %arg30: memref<1x32xf32, #tpu.memory_space<vmem>>, %arg31: memref<1x8x32xf32, #tpu.memory_space<vmem>>) attributes {dimension_semantics = [#tpu.dimension_semantics<parallel>], iteration_bounds = array<i64: 2>, scalar_prefetch = 0 : i64, scratch_operands = 0 : i64, tpu.core_type = #tpu.core_type<tc>, window_params = [{transform_indices = @transform_0, window_bounds = array<i64: 1, 8, 32>}, {transform_indices = @transform_1, window_bounds = array<i64: 1, 8, 32>}, {transform_indices = @transform_2, window_bounds = array<i64: 1, 8, 8>}, {transform_indices = @transform_3, window_bounds = array<i64: 1, 8, 8>}, {pipeline_mode = #tpu.pipeline_mode<synchronous>, transform_indices = @transform_4, window_bounds = array<i64: 32, 32>}, {pipeline_mode = #tpu.pipeline_mode<synchronous>, transform_indices = @transform_5, window_bounds = array<i64: 1, 32>}, {pipeline_mode = #tpu.pipeline_mode<synchronous>, transform_indices = @transform_6, window_bounds = array<i64: 32, 32>}, {pipeline_mode = #tpu.pipeline_mode<synchronous>, transform_indices = @transform_7, window_bounds = array<i64: 1, 32>}, {pipeline_mode = #tpu.pipeline_mode<synchronous>, transform_indices = @transform_8, window_bounds = array<i64: 32, 32>}, {pipeline_mode = #tpu.pipeline_mode<synchronous>, transform_indices = @transform_9, window_bounds = array<i64: 1, 32>}, {pipeline_mode = #tpu.pipeline_mode<synchronous>, transform_indices = @transform_10, window_bounds = array<i64: 32, 32>}, {pipeline_mode = #tpu.pipeline_mode<synchronous>, transform_indices = @transform_11, window_bounds = array<i64: 1, 32>}, {pipeline_mode = #tpu.pipeline_mode<synchronous>, transform_indices = @transform_12, window_bounds = array<i64: 32, 32>}, {pipeline_mode = #tpu.pipeline_mode<synchronous>, transform_indices = @transform_13, window_bounds = array<i64: 1, 32>}, {pipeline_mode = #tpu.pipeline_mode<synchronous>, transform_indices = @transform_14, window_bounds = array<i64: 32, 32>}, {pipeline_mode = #tpu.pipeline_mode<synchronous>, transform_indices = @transform_15, window_bounds = array<i64: 1, 32>}, {pipeline_mode = #tpu.pipeline_mode<synchronous>, transform_indices = @transform_16, window_bounds = array<i64: 32, 32>}, {pipeline_mode = #tpu.pipeline_mode<synchronous>, transform_indices = @transform_17, window_bounds = array<i64: 1, 32>}, {pipeline_mode = #tpu.pipeline_mode<synchronous>, transform_indices = @transform_18, window_bounds = array<i64: 32, 32>}, {pipeline_mode = #tpu.pipeline_mode<synchronous>, transform_indices = @transform_19, window_bounds = array<i64: 1, 32>}, {pipeline_mode = #tpu.pipeline_mode<synchronous>, transform_indices = @transform_20, window_bounds = array<i64: 1, 32>}, {pipeline_mode = #tpu.pipeline_mode<synchronous>, transform_indices = @transform_21, window_bounds = array<i64: 1, 32>}, {pipeline_mode = #tpu.pipeline_mode<synchronous>, transform_indices = @transform_22, window_bounds = array<i64: 1, 32>}, {pipeline_mode = #tpu.pipeline_mode<synchronous>, transform_indices = @transform_23, window_bounds = array<i64: 1, 32>}, {pipeline_mode = #tpu.pipeline_mode<synchronous>, transform_indices = @transform_24, window_bounds = array<i64: 1, 32>}, {pipeline_mode = #tpu.pipeline_mode<synchronous>, transform_indices = @transform_25, window_bounds = array<i64: 1, 32>}, {pipeline_mode = #tpu.pipeline_mode<synchronous>, transform_indices = @transform_26, window_bounds = array<i64: 32, 64>}, {pipeline_mode = #tpu.pipeline_mode<synchronous>, transform_indices = @transform_27, window_bounds = array<i64: 1, 64>}, {pipeline_mode = #tpu.pipeline_mode<synchronous>, transform_indices = @transform_28, window_bounds = array<i64: 64, 32>}, {pipeline_mode = #tpu.pipeline_mode<synchronous>, transform_indices = @transform_29, window_bounds = array<i64: 1, 32>}, {transform_indices = @transform_30, window_bounds = array<i64: 1, 8, 32>}]} {
    %c0 = arith.constant 0 : index
    %c0_0 = arith.constant 0 : index
    %c0_1 = arith.constant 0 : index
    %0 = vector.load %arg1[%c0, %c0_0, %c0_1] : memref<1x8x32xf32, #tpu.memory_space<vmem>>, vector<1x8x32xf32>
    %1 = vector.shape_cast %0 : vector<1x8x32xf32> to vector<8x32xf32>
    %c0_2 = arith.constant 0 : index
    %c0_3 = arith.constant 0 : index
    %c0_4 = arith.constant 0 : index
    %2 = vector.load %arg2[%c0_2, %c0_3, %c0_4] : memref<1x8x32xf32, #tpu.memory_space<vmem>>, vector<1x8x32xf32>
    %3 = vector.shape_cast %2 : vector<1x8x32xf32> to vector<8x32xf32>
    %c0_5 = arith.constant 0 : index
    %c0_6 = arith.constant 0 : index
    %c0_7 = arith.constant 0 : index
    %4 = vector.load %arg3[%c0_5, %c0_6, %c0_7] : memref<1x8x8xf32, #tpu.memory_space<vmem>>, vector<1x8x8xf32>
    %c0_8 = arith.constant 0 : index
    %c0_9 = arith.constant 0 : index
    %c0_10 = arith.constant 0 : index
    %5 = vector.load %arg4[%c0_8, %c0_9, %c0_10] : memref<1x8x8xf32, #tpu.memory_space<vmem>>, vector<1x8x8xf32>
    %6 = arith.truncf %1 : vector<8x32xf32> to vector<8x32xbf16>
    %c0_11 = arith.constant 0 : index
    %c0_12 = arith.constant 0 : index
    %7 = vector.load %arg5[%c0_11, %c0_12] : memref<32x32xbf16, #tpu.memory_space<vmem>>, vector<32x32xbf16>
    %cst = arith.constant dense<0.000000e+00> : vector<8x32xf32>
    %8 = tpu.matmul %6, %7, %cst {dimension_numbers = #tpu.dot_dimension_numbers<[1], [0], [0], [1], [0, 0, 1, 1], [], []>} : vector<8x32xbf16>, vector<32x32xbf16>, vector<8x32xf32> -> vector<8x32xf32>
    %c0_13 = arith.constant 0 : index
    %c0_14 = arith.constant 0 : index
    %9 = vector.load %arg6[%c0_13, %c0_14] : memref<1x32xf32, #tpu.memory_space<vmem>>, vector<1x32xf32>
    %10 = vector.broadcast %9 : vector<1x32xf32> to vector<8x32xf32>
    %11 = arith.addf %8, %10 : vector<8x32xf32>
    %12 = arith.truncf %1 : vector<8x32xf32> to vector<8x32xbf16>
    %c0_15 = arith.constant 0 : index
    %c0_16 = arith.constant 0 : index
    %13 = vector.load %arg7[%c0_15, %c0_16] : memref<32x32xbf16, #tpu.memory_space<vmem>>, vector<32x32xbf16>
    %cst_17 = arith.constant dense<0.000000e+00> : vector<8x32xf32>
    %14 = tpu.matmul %12, %13, %cst_17 {dimension_numbers = #tpu.dot_dimension_numbers<[1], [0], [0], [1], [0, 0, 1, 1], [], []>} : vector<8x32xbf16>, vector<32x32xbf16>, vector<8x32xf32> -> vector<8x32xf32>
    %c0_18 = arith.constant 0 : index
    %c0_19 = arith.constant 0 : index
    %15 = vector.load %arg8[%c0_18, %c0_19] : memref<1x32xf32, #tpu.memory_space<vmem>>, vector<1x32xf32>
    %16 = vector.broadcast %15 : vector<1x32xf32> to vector<8x32xf32>
    %17 = arith.addf %14, %16 : vector<8x32xf32>
    %18 = arith.truncf %1 : vector<8x32xf32> to vector<8x32xbf16>
    %c0_20 = arith.constant 0 : index
    %c0_21 = arith.constant 0 : index
    %19 = vector.load %arg9[%c0_20, %c0_21] : memref<32x32xbf16, #tpu.memory_space<vmem>>, vector<32x32xbf16>
    %cst_22 = arith.constant dense<0.000000e+00> : vector<8x32xf32>
    %20 = tpu.matmul %18, %19, %cst_22 {dimension_numbers = #tpu.dot_dimension_numbers<[1], [0], [0], [1], [0, 0, 1, 1], [], []>} : vector<8x32xbf16>, vector<32x32xbf16>, vector<8x32xf32> -> vector<8x32xf32>
    %c0_23 = arith.constant 0 : index
    %c0_24 = arith.constant 0 : index
    %21 = vector.load %arg10[%c0_23, %c0_24] : memref<1x32xf32, #tpu.memory_space<vmem>>, vector<1x32xf32>
    %22 = vector.broadcast %21 : vector<1x32xf32> to vector<8x32xf32>
    %23 = arith.addf %20, %22 : vector<8x32xf32>
    %24 = vector.shape_cast %11 : vector<8x32xf32> to vector<8x4x8xf32>
    %25 = tpu.transpose %24, [1, 0, 2] : vector<8x4x8xf32> -> vector<4x8x8xf32>
    %26 = vector.shape_cast %17 : vector<8x32xf32> to vector<8x4x8xf32>
    %27 = tpu.transpose %26, [1, 0, 2] : vector<8x4x8xf32> -> vector<4x8x8xf32>
    %28 = vector.shape_cast %23 : vector<8x32xf32> to vector<8x4x8xf32>
    %29 = tpu.transpose %28, [1, 0, 2] : vector<8x4x8xf32> -> vector<4x8x8xf32>
    %30 = arith.truncf %25 : vector<4x8x8xf32> to vector<4x8x8xbf16>
    %31 = arith.truncf %27 : vector<4x8x8xf32> to vector<4x8x8xbf16>
    "tpu.trace_start"() <{level = 10 : i32, message = "hqd,hkd->hqk"}> : () -> ()
    %cst_25 = arith.constant dense<0.000000e+00> : vector<4x8x8xf32>
    %32 = tpu.matmul %30, %31, %cst_25 {dimension_numbers = #tpu.dot_dimension_numbers<[2], [2], [1], [1], [0, 0, 0, 1, 1, 1], [0], [0]>} : vector<4x8x8xbf16>, vector<4x8x8xbf16>, vector<4x8x8xf32> -> vector<4x8x8xf32>
    "tpu.trace_stop"() : () -> ()
    %33 = vector.shape_cast %4 : vector<1x8x8xf32> to vector<8x8xf32>
    %34 = vector.shape_cast %33 : vector<8x8xf32> to vector<1x8x8xf32>
    %35 = vector.broadcast %34 : vector<1x8x8xf32> to vector<4x8x8xf32>
    %36 = arith.addf %32, %35 : vector<4x8x8xf32>
    %cst_26 = arith.constant dense<0xFF800000> : vector<4x8xf32>
    %37 = vector.multi_reduction <maximumf>, %36, %cst_26 [2] : vector<4x8x8xf32> to vector<4x8xf32>
    %38 = vector.shape_cast %37 : vector<4x8xf32> to vector<4x8x1xf32>
    %39 = vector.broadcast %38 : vector<4x8x1xf32> to vector<4x8x8xf32>
    %40 = arith.subf %36, %39 : vector<4x8x8xf32>
    %41 = math.exp %40 : vector<4x8x8xf32>
    %cst_27 = arith.constant dense<0.000000e+00> : vector<4x8xf32>
    %42 = vector.multi_reduction <add>, %41, %cst_27 [2] : vector<4x8x8xf32> to vector<4x8xf32>
    %43 = vector.shape_cast %42 : vector<4x8xf32> to vector<4x8x1xf32>
    %44 = tpu.reciprocal %43 {approx = true} : vector<4x8x1xf32> -> vector<4x8x1xf32>
    %45 = vector.broadcast %44 : vector<4x8x1xf32> to vector<4x8x8xf32>
    %46 = arith.mulf %41, %45 : vector<4x8x8xf32>
    %47 = arith.truncf %46 : vector<4x8x8xf32> to vector<4x8x8xbf16>
    %48 = arith.truncf %29 : vector<4x8x8xf32> to vector<4x8x8xbf16>
    "tpu.trace_start"() <{level = 10 : i32, message = "hqk,hkd->hqd"}> : () -> ()
    %cst_28 = arith.constant dense<0.000000e+00> : vector<4x8x8xf32>
    %49 = tpu.matmul %47, %48, %cst_28 {dimension_numbers = #tpu.dot_dimension_numbers<[2], [1], [1], [2], [0, 0, 0, 1, 1, 2], [0], [0]>} : vector<4x8x8xbf16>, vector<4x8x8xbf16>, vector<4x8x8xf32> -> vector<4x8x8xf32>
    "tpu.trace_stop"() : () -> ()
    %50 = tpu.transpose %49, [1, 0, 2] : vector<4x8x8xf32> -> vector<8x4x8xf32>
    %51 = vector.shape_cast %50 : vector<8x4x8xf32> to vector<8x32xf32>
    %52 = arith.truncf %51 : vector<8x32xf32> to vector<8x32xbf16>
    %c0_29 = arith.constant 0 : index
    %c0_30 = arith.constant 0 : index
    %53 = vector.load %arg11[%c0_29, %c0_30] : memref<32x32xbf16, #tpu.memory_space<vmem>>, vector<32x32xbf16>
    %cst_31 = arith.constant dense<0.000000e+00> : vector<8x32xf32>
    %54 = tpu.matmul %52, %53, %cst_31 {dimension_numbers = #tpu.dot_dimension_numbers<[1], [0], [0], [1], [0, 0, 1, 1], [], []>} : vector<8x32xbf16>, vector<32x32xbf16>, vector<8x32xf32> -> vector<8x32xf32>
    %c0_32 = arith.constant 0 : index
    %c0_33 = arith.constant 0 : index
    %55 = vector.load %arg12[%c0_32, %c0_33] : memref<1x32xf32, #tpu.memory_space<vmem>>, vector<1x32xf32>
    %56 = vector.broadcast %55 : vector<1x32xf32> to vector<8x32xf32>
    %57 = arith.addf %54, %56 : vector<8x32xf32>
    %58 = arith.addf %1, %57 : vector<8x32xf32>
    %c0_34 = arith.constant 0 : index
    %c0_35 = arith.constant 0 : index
    %59 = vector.load %arg21[%c0_34, %c0_35] : memref<1x32xf32, #tpu.memory_space<vmem>>, vector<1x32xf32>
    %c0_36 = arith.constant 0 : index
    %c0_37 = arith.constant 0 : index
    %60 = vector.load %arg22[%c0_36, %c0_37] : memref<1x32xf32, #tpu.memory_space<vmem>>, vector<1x32xf32>
    %cst_38 = arith.constant dense<0.000000e+00> : vector<8xf32>
    %61 = vector.multi_reduction <add>, %58, %cst_38 [1] : vector<8x32xf32> to vector<8xf32>
    %62 = vector.shape_cast %61 : vector<8xf32> to vector<8x1xf32>
    %cst_39 = arith.constant 3.200000e+01 : f32
    %63 = vector.broadcast %cst_39 : f32 to vector<8x1xf32>
    %64 = arith.divf %62, %63 : vector<8x1xf32>
    %65 = vector.broadcast %64 : vector<8x1xf32> to vector<8x32xf32>
    %66 = arith.subf %58, %65 : vector<8x32xf32>
    %67 = arith.mulf %66, %66 : vector<8x32xf32>
    %cst_40 = arith.constant dense<0.000000e+00> : vector<8xf32>
    %68 = vector.multi_reduction <add>, %67, %cst_40 [1] : vector<8x32xf32> to vector<8xf32>
    %69 = vector.shape_cast %68 : vector<8xf32> to vector<8x1xf32>
    %cst_41 = arith.constant 3.200000e+01 : f32
    %70 = vector.broadcast %cst_41 : f32 to vector<8x1xf32>
    %71 = arith.divf %69, %70 : vector<8x1xf32>
    %72 = vector.broadcast %64 : vector<8x1xf32> to vector<8x32xf32>
    %73 = arith.subf %58, %72 : vector<8x32xf32>
    %cst_42 = arith.constant 9.99999997E-7 : f32
    %74 = vector.broadcast %cst_42 : f32 to vector<8x1xf32>
    %75 = arith.addf %71, %74 : vector<8x1xf32>
    %76 = math.rsqrt %75 : vector<8x1xf32>
    %77 = vector.broadcast %76 : vector<8x1xf32> to vector<8x32xf32>
    %78 = arith.mulf %73, %77 : vector<8x32xf32>
    %79 = vector.broadcast %59 : vector<1x32xf32> to vector<8x32xf32>
    %80 = arith.mulf %78, %79 : vector<8x32xf32>
    %81 = vector.broadcast %60 : vector<1x32xf32> to vector<8x32xf32>
    %82 = arith.addf %80, %81 : vector<8x32xf32>
    %83 = arith.truncf %82 : vector<8x32xf32> to vector<8x32xbf16>
    %c0_43 = arith.constant 0 : index
    %c0_44 = arith.constant 0 : index
    %84 = vector.load %arg13[%c0_43, %c0_44] : memref<32x32xbf16, #tpu.memory_space<vmem>>, vector<32x32xbf16>
    %cst_45 = arith.constant dense<0.000000e+00> : vector<8x32xf32>
    %85 = tpu.matmul %83, %84, %cst_45 {dimension_numbers = #tpu.dot_dimension_numbers<[1], [0], [0], [1], [0, 0, 1, 1], [], []>} : vector<8x32xbf16>, vector<32x32xbf16>, vector<8x32xf32> -> vector<8x32xf32>
    %c0_46 = arith.constant 0 : index
    %c0_47 = arith.constant 0 : index
    %86 = vector.load %arg14[%c0_46, %c0_47] : memref<1x32xf32, #tpu.memory_space<vmem>>, vector<1x32xf32>
    %87 = vector.broadcast %86 : vector<1x32xf32> to vector<8x32xf32>
    %88 = arith.addf %85, %87 : vector<8x32xf32>
    %89 = arith.truncf %3 : vector<8x32xf32> to vector<8x32xbf16>
    %c0_48 = arith.constant 0 : index
    %c0_49 = arith.constant 0 : index
    %90 = vector.load %arg15[%c0_48, %c0_49] : memref<32x32xbf16, #tpu.memory_space<vmem>>, vector<32x32xbf16>
    %cst_50 = arith.constant dense<0.000000e+00> : vector<8x32xf32>
    %91 = tpu.matmul %89, %90, %cst_50 {dimension_numbers = #tpu.dot_dimension_numbers<[1], [0], [0], [1], [0, 0, 1, 1], [], []>} : vector<8x32xbf16>, vector<32x32xbf16>, vector<8x32xf32> -> vector<8x32xf32>
    %c0_51 = arith.constant 0 : index
    %c0_52 = arith.constant 0 : index
    %92 = vector.load %arg16[%c0_51, %c0_52] : memref<1x32xf32, #tpu.memory_space<vmem>>, vector<1x32xf32>
    %93 = vector.broadcast %92 : vector<1x32xf32> to vector<8x32xf32>
    %94 = arith.addf %91, %93 : vector<8x32xf32>
    %95 = arith.truncf %3 : vector<8x32xf32> to vector<8x32xbf16>
    %c0_53 = arith.constant 0 : index
    %c0_54 = arith.constant 0 : index
    %96 = vector.load %arg17[%c0_53, %c0_54] : memref<32x32xbf16, #tpu.memory_space<vmem>>, vector<32x32xbf16>
    %cst_55 = arith.constant dense<0.000000e+00> : vector<8x32xf32>
    %97 = tpu.matmul %95, %96, %cst_55 {dimension_numbers = #tpu.dot_dimension_numbers<[1], [0], [0], [1], [0, 0, 1, 1], [], []>} : vector<8x32xbf16>, vector<32x32xbf16>, vector<8x32xf32> -> vector<8x32xf32>
    %c0_56 = arith.constant 0 : index
    %c0_57 = arith.constant 0 : index
    %98 = vector.load %arg18[%c0_56, %c0_57] : memref<1x32xf32, #tpu.memory_space<vmem>>, vector<1x32xf32>
    %99 = vector.broadcast %98 : vector<1x32xf32> to vector<8x32xf32>
    %100 = arith.addf %97, %99 : vector<8x32xf32>
    %101 = vector.shape_cast %88 : vector<8x32xf32> to vector<8x4x8xf32>
    %102 = tpu.transpose %101, [1, 0, 2] : vector<8x4x8xf32> -> vector<4x8x8xf32>
    %103 = vector.shape_cast %94 : vector<8x32xf32> to vector<8x4x8xf32>
    %104 = tpu.transpose %103, [1, 0, 2] : vector<8x4x8xf32> -> vector<4x8x8xf32>
    %105 = vector.shape_cast %100 : vector<8x32xf32> to vector<8x4x8xf32>
    %106 = tpu.transpose %105, [1, 0, 2] : vector<8x4x8xf32> -> vector<4x8x8xf32>
    %107 = arith.truncf %102 : vector<4x8x8xf32> to vector<4x8x8xbf16>
    %108 = arith.truncf %104 : vector<4x8x8xf32> to vector<4x8x8xbf16>
    "tpu.trace_start"() <{level = 10 : i32, message = "hqd,hkd->hqk"}> : () -> ()
    %cst_58 = arith.constant dense<0.000000e+00> : vector<4x8x8xf32>
    %109 = tpu.matmul %107, %108, %cst_58 {dimension_numbers = #tpu.dot_dimension_numbers<[2], [2], [1], [1], [0, 0, 0, 1, 1, 1], [0], [0]>} : vector<4x8x8xbf16>, vector<4x8x8xbf16>, vector<4x8x8xf32> -> vector<4x8x8xf32>
    "tpu.trace_stop"() : () -> ()
    %110 = vector.shape_cast %5 : vector<1x8x8xf32> to vector<8x8xf32>
    %111 = vector.shape_cast %110 : vector<8x8xf32> to vector<1x8x8xf32>
    %112 = vector.broadcast %111 : vector<1x8x8xf32> to vector<4x8x8xf32>
    %113 = arith.addf %109, %112 : vector<4x8x8xf32>
    %cst_59 = arith.constant dense<0xFF800000> : vector<4x8xf32>
    %114 = vector.multi_reduction <maximumf>, %113, %cst_59 [2] : vector<4x8x8xf32> to vector<4x8xf32>
    %115 = vector.shape_cast %114 : vector<4x8xf32> to vector<4x8x1xf32>
    %116 = vector.broadcast %115 : vector<4x8x1xf32> to vector<4x8x8xf32>
    %117 = arith.subf %113, %116 : vector<4x8x8xf32>
    %118 = math.exp %117 : vector<4x8x8xf32>
    %cst_60 = arith.constant dense<0.000000e+00> : vector<4x8xf32>
    %119 = vector.multi_reduction <add>, %118, %cst_60 [2] : vector<4x8x8xf32> to vector<4x8xf32>
    %120 = vector.shape_cast %119 : vector<4x8xf32> to vector<4x8x1xf32>
    %121 = tpu.reciprocal %120 {approx = true} : vector<4x8x1xf32> -> vector<4x8x1xf32>
    %122 = vector.broadcast %121 : vector<4x8x1xf32> to vector<4x8x8xf32>
    %123 = arith.mulf %118, %122 : vector<4x8x8xf32>
    %124 = arith.truncf %123 : vector<4x8x8xf32> to vector<4x8x8xbf16>
    %125 = arith.truncf %106 : vector<4x8x8xf32> to vector<4x8x8xbf16>
    "tpu.trace_start"() <{level = 10 : i32, message = "hqk,hkd->hqd"}> : () -> ()
    %cst_61 = arith.constant dense<0.000000e+00> : vector<4x8x8xf32>
    %126 = tpu.matmul %124, %125, %cst_61 {dimension_numbers = #tpu.dot_dimension_numbers<[2], [1], [1], [2], [0, 0, 0, 1, 1, 2], [0], [0]>} : vector<4x8x8xbf16>, vector<4x8x8xbf16>, vector<4x8x8xf32> -> vector<4x8x8xf32>
    "tpu.trace_stop"() : () -> ()
    %127 = tpu.transpose %126, [1, 0, 2] : vector<4x8x8xf32> -> vector<8x4x8xf32>
    %128 = vector.shape_cast %127 : vector<8x4x8xf32> to vector<8x32xf32>
    %129 = arith.truncf %128 : vector<8x32xf32> to vector<8x32xbf16>
    %c0_62 = arith.constant 0 : index
    %c0_63 = arith.constant 0 : index
    %130 = vector.load %arg19[%c0_62, %c0_63] : memref<32x32xbf16, #tpu.memory_space<vmem>>, vector<32x32xbf16>
    %cst_64 = arith.constant dense<0.000000e+00> : vector<8x32xf32>
    %131 = tpu.matmul %129, %130, %cst_64 {dimension_numbers = #tpu.dot_dimension_numbers<[1], [0], [0], [1], [0, 0, 1, 1], [], []>} : vector<8x32xbf16>, vector<32x32xbf16>, vector<8x32xf32> -> vector<8x32xf32>
    %c0_65 = arith.constant 0 : index
    %c0_66 = arith.constant 0 : index
    %132 = vector.load %arg20[%c0_65, %c0_66] : memref<1x32xf32, #tpu.memory_space<vmem>>, vector<1x32xf32>
    %133 = vector.broadcast %132 : vector<1x32xf32> to vector<8x32xf32>
    %134 = arith.addf %131, %133 : vector<8x32xf32>
    %135 = arith.addf %82, %134 : vector<8x32xf32>
    %c0_67 = arith.constant 0 : index
    %c0_68 = arith.constant 0 : index
    %136 = vector.load %arg23[%c0_67, %c0_68] : memref<1x32xf32, #tpu.memory_space<vmem>>, vector<1x32xf32>
    %c0_69 = arith.constant 0 : index
    %c0_70 = arith.constant 0 : index
    %137 = vector.load %arg24[%c0_69, %c0_70] : memref<1x32xf32, #tpu.memory_space<vmem>>, vector<1x32xf32>
    %cst_71 = arith.constant dense<0.000000e+00> : vector<8xf32>
    %138 = vector.multi_reduction <add>, %135, %cst_71 [1] : vector<8x32xf32> to vector<8xf32>
    %139 = vector.shape_cast %138 : vector<8xf32> to vector<8x1xf32>
    %cst_72 = arith.constant 3.200000e+01 : f32
    %140 = vector.broadcast %cst_72 : f32 to vector<8x1xf32>
    %141 = arith.divf %139, %140 : vector<8x1xf32>
    %142 = vector.broadcast %141 : vector<8x1xf32> to vector<8x32xf32>
    %143 = arith.subf %135, %142 : vector<8x32xf32>
    %144 = arith.mulf %143, %143 : vector<8x32xf32>
    %cst_73 = arith.constant dense<0.000000e+00> : vector<8xf32>
    %145 = vector.multi_reduction <add>, %144, %cst_73 [1] : vector<8x32xf32> to vector<8xf32>
    %146 = vector.shape_cast %145 : vector<8xf32> to vector<8x1xf32>
    %cst_74 = arith.constant 3.200000e+01 : f32
    %147 = vector.broadcast %cst_74 : f32 to vector<8x1xf32>
    %148 = arith.divf %146, %147 : vector<8x1xf32>
    %149 = vector.broadcast %141 : vector<8x1xf32> to vector<8x32xf32>
    %150 = arith.subf %135, %149 : vector<8x32xf32>
    %cst_75 = arith.constant 9.99999997E-7 : f32
    %151 = vector.broadcast %cst_75 : f32 to vector<8x1xf32>
    %152 = arith.addf %148, %151 : vector<8x1xf32>
    %153 = math.rsqrt %152 : vector<8x1xf32>
    %154 = vector.broadcast %153 : vector<8x1xf32> to vector<8x32xf32>
    %155 = arith.mulf %150, %154 : vector<8x32xf32>
    %156 = vector.broadcast %136 : vector<1x32xf32> to vector<8x32xf32>
    %157 = arith.mulf %155, %156 : vector<8x32xf32>
    %158 = vector.broadcast %137 : vector<1x32xf32> to vector<8x32xf32>
    %159 = arith.addf %157, %158 : vector<8x32xf32>
    %160 = arith.truncf %159 : vector<8x32xf32> to vector<8x32xbf16>
    %c0_76 = arith.constant 0 : index
    %c0_77 = arith.constant 0 : index
    %161 = vector.load %arg27[%c0_76, %c0_77] : memref<32x64xbf16, #tpu.memory_space<vmem>>, vector<32x64xbf16>
    %cst_78 = arith.constant dense<0.000000e+00> : vector<8x64xf32>
    %162 = tpu.matmul %160, %161, %cst_78 {dimension_numbers = #tpu.dot_dimension_numbers<[1], [0], [0], [1], [0, 0, 1, 1], [], []>} : vector<8x32xbf16>, vector<32x64xbf16>, vector<8x64xf32> -> vector<8x64xf32>
    %c0_79 = arith.constant 0 : index
    %c0_80 = arith.constant 0 : index
    %163 = vector.load %arg28[%c0_79, %c0_80] : memref<1x64xf32, #tpu.memory_space<vmem>>, vector<1x64xf32>
    %164 = vector.broadcast %163 : vector<1x64xf32> to vector<8x64xf32>
    %165 = arith.addf %162, %164 : vector<8x64xf32>
    %cst_81 = arith.constant 0.000000e+00 : f32
    %166 = vector.broadcast %cst_81 : f32 to vector<8x64xf32>
    %167 = arith.maximumf %165, %166 : vector<8x64xf32>
    %168 = arith.truncf %167 : vector<8x64xf32> to vector<8x64xbf16>
    %c0_82 = arith.constant 0 : index
    %c0_83 = arith.constant 0 : index
    %169 = vector.load %arg29[%c0_82, %c0_83] : memref<64x32xbf16, #tpu.memory_space<vmem>>, vector<64x32xbf16>
    %cst_84 = arith.constant dense<0.000000e+00> : vector<8x32xf32>
    %170 = tpu.matmul %168, %169, %cst_84 {dimension_numbers = #tpu.dot_dimension_numbers<[1], [0], [0], [1], [0, 0, 1, 1], [], []>} : vector<8x64xbf16>, vector<64x32xbf16>, vector<8x32xf32> -> vector<8x32xf32>
    %c0_85 = arith.constant 0 : index
    %c0_86 = arith.constant 0 : index
    %171 = vector.load %arg30[%c0_85, %c0_86] : memref<1x32xf32, #tpu.memory_space<vmem>>, vector<1x32xf32>
    %172 = vector.broadcast %171 : vector<1x32xf32> to vector<8x32xf32>
    %173 = arith.addf %170, %172 : vector<8x32xf32>
    %174 = arith.addf %159, %173 : vector<8x32xf32>
    %c0_87 = arith.constant 0 : index
    %c0_88 = arith.constant 0 : index
    %175 = vector.load %arg25[%c0_87, %c0_88] : memref<1x32xf32, #tpu.memory_space<vmem>>, vector<1x32xf32>
    %c0_89 = arith.constant 0 : index
    %c0_90 = arith.constant 0 : index
    %176 = vector.load %arg26[%c0_89, %c0_90] : memref<1x32xf32, #tpu.memory_space<vmem>>, vector<1x32xf32>
    %cst_91 = arith.constant dense<0.000000e+00> : vector<8xf32>
    %177 = vector.multi_reduction <add>, %174, %cst_91 [1] : vector<8x32xf32> to vector<8xf32>
    %178 = vector.shape_cast %177 : vector<8xf32> to vector<8x1xf32>
    %cst_92 = arith.constant 3.200000e+01 : f32
    %179 = vector.broadcast %cst_92 : f32 to vector<8x1xf32>
    %180 = arith.divf %178, %179 : vector<8x1xf32>
    %181 = vector.broadcast %180 : vector<8x1xf32> to vector<8x32xf32>
    %182 = arith.subf %174, %181 : vector<8x32xf32>
    %183 = arith.mulf %182, %182 : vector<8x32xf32>
    %cst_93 = arith.constant dense<0.000000e+00> : vector<8xf32>
    %184 = vector.multi_reduction <add>, %183, %cst_93 [1] : vector<8x32xf32> to vector<8xf32>
    %185 = vector.shape_cast %184 : vector<8xf32> to vector<8x1xf32>
    %cst_94 = arith.constant 3.200000e+01 : f32
    %186 = vector.broadcast %cst_94 : f32 to vector<8x1xf32>
    %187 = arith.divf %185, %186 : vector<8x1xf32>
    %188 = vector.broadcast %180 : vector<8x1xf32> to vector<8x32xf32>
    %189 = arith.subf %174, %188 : vector<8x32xf32>
    %cst_95 = arith.constant 9.99999997E-7 : f32
    %190 = vector.broadcast %cst_95 : f32 to vector<8x1xf32>
    %191 = arith.addf %187, %190 : vector<8x1xf32>
    %192 = math.rsqrt %191 : vector<8x1xf32>
    %193 = vector.broadcast %192 : vector<8x1xf32> to vector<8x32xf32>
    %194 = arith.mulf %189, %193 : vector<8x32xf32>
    %195 = vector.broadcast %175 : vector<1x32xf32> to vector<8x32xf32>
    %196 = arith.mulf %194, %195 : vector<8x32xf32>
    %197 = vector.broadcast %176 : vector<1x32xf32> to vector<8x32xf32>
    %198 = arith.addf %196, %197 : vector<8x32xf32>
    %199 = vector.shape_cast %198 : vector<8x32xf32> to vector<1x8x32xf32>
    %c0_96 = arith.constant 0 : index
    %c0_97 = arith.constant 0 : index
    %c0_98 = arith.constant 0 : index
    %200 = vector.load %arg31[%c0_96, %c0_97, %c0_98] : memref<1x8x32xf32, #tpu.memory_space<vmem>>, vector<1x8x32xf32>
    tpu.vector_store %arg31[%c0_96, %c0_97, %c0_98], %199 {strides = array<i32>} : memref<1x8x32xf32, #tpu.memory_space<vmem>>, vector<1x8x32xf32>,
    return
  }
  func.func @transform_0(%arg0: i32) -> (i32, i32, i32) {
    %c0_i32 = arith.constant 0 : i32
    %c0_i32_0 = arith.constant 0 : i32
    %c0_i32_1 = arith.constant 0 : i32
    return %arg0, %c0_i32, %c0_i32_0 : i32, i32, i32
  }
  func.func @transform_1(%arg0: i32) -> (i32, i32, i32) {
    %c0_i32 = arith.constant 0 : i32
    %c0_i32_0 = arith.constant 0 : i32
    %c0_i32_1 = arith.constant 0 : i32
    return %arg0, %c0_i32, %c0_i32_0 : i32, i32, i32
  }
  func.func @transform_2(%arg0: i32) -> (i32, i32, i32) {
    %c0_i32 = arith.constant 0 : i32
    %c0_i32_0 = arith.constant 0 : i32
    %c0_i32_1 = arith.constant 0 : i32
    return %arg0, %c0_i32, %c0_i32_0 : i32, i32, i32
  }
  func.func @transform_3(%arg0: i32) -> (i32, i32, i32) {
    %c0_i32 = arith.constant 0 : i32
    %c0_i32_0 = arith.constant 0 : i32
    %c0_i32_1 = arith.constant 0 : i32
    return %arg0, %c0_i32, %c0_i32_0 : i32, i32, i32
  }
  func.func @transform_4(%arg0: i32) -> (i32, i32) {
    %c0_i32 = arith.constant 0 : i32
    %c0_i32_0 = arith.constant 0 : i32
    %c0_i32_1 = arith.constant 0 : i32
    return %c0_i32, %c0_i32_0 : i32, i32
  }
  func.func @transform_5(%arg0: i32) -> (i32, i32) {
    %c0_i32 = arith.constant 0 : i32
    %c0_i32_0 = arith.constant 0 : i32
    %c0_i32_1 = arith.constant 0 : i32
    return %c0_i32, %c0_i32_0 : i32, i32
  }
  func.func @transform_6(%arg0: i32) -> (i32, i32) {
    %c0_i32 = arith.constant 0 : i32
    %c0_i32_0 = arith.constant 0 : i32
    %c0_i32_1 = arith.constant 0 : i32
    return %c0_i32, %c0_i32_0 : i32, i32
  }
  func.func @transform_7(%arg0: i32) -> (i32, i32) {
    %c0_i32 = arith.constant 0 : i32
    %c0_i32_0 = arith.constant 0 : i32
    %c0_i32_1 = arith.constant 0 : i32
    return %c0_i32, %c0_i32_0 : i32, i32
  }
  func.func @transform_8(%arg0: i32) -> (i32, i32) {
    %c0_i32 = arith.constant 0 : i32
    %c0_i32_0 = arith.constant 0 : i32
    %c0_i32_1 = arith.constant 0 : i32
    return %c0_i32, %c0_i32_0 : i32, i32
  }
  func.func @transform_9(%arg0: i32) -> (i32, i32) {
    %c0_i32 = arith.constant 0 : i32
    %c0_i32_0 = arith.constant 0 : i32
    %c0_i32_1 = arith.constant 0 : i32
    return %c0_i32, %c0_i32_0 : i32, i32
  }
  func.func @transform_10(%arg0: i32) -> (i32, i32) {
    %c0_i32 = arith.constant 0 : i32
    %c0_i32_0 = arith.constant 0 : i32
    %c0_i32_1 = arith.constant 0 : i32
    return %c0_i32, %c0_i32_0 : i32, i32
  }
  func.func @transform_11(%arg0: i32) -> (i32, i32) {
    %c0_i32 = arith.constant 0 : i32
    %c0_i32_0 = arith.constant 0 : i32
    %c0_i32_1 = arith.constant 0 : i32
    return %c0_i32, %c0_i32_0 : i32, i32
  }
  func.func @transform_12(%arg0: i32) -> (i32, i32) {
    %c0_i32 = arith.constant 0 : i32
    %c0_i32_0 = arith.constant 0 : i32
    %c0_i32_1 = arith.constant 0 : i32
    return %c0_i32, %c0_i32_0 : i32, i32
  }
  func.func @transform_13(%arg0: i32) -> (i32, i32) {
    %c0_i32 = arith.constant 0 : i32
    %c0_i32_0 = arith.constant 0 : i32
    %c0_i32_1 = arith.constant 0 : i32
    return %c0_i32, %c0_i32_0 : i32, i32
  }
  func.func @transform_14(%arg0: i32) -> (i32, i32) {
    %c0_i32 = arith.constant 0 : i32
    %c0_i32_0 = arith.constant 0 : i32
    %c0_i32_1 = arith.constant 0 : i32
    return %c0_i32, %c0_i32_0 : i32, i32
  }
  func.func @transform_15(%arg0: i32) -> (i32, i32) {
    %c0_i32 = arith.constant 0 : i32
    %c0_i32_0 = arith.constant 0 : i32
    %c0_i32_1 = arith.constant 0 : i32
    return %c0_i32, %c0_i32_0 : i32, i32
  }
  func.func @transform_16(%arg0: i32) -> (i32, i32) {
    %c0_i32 = arith.constant 0 : i32
    %c0_i32_0 = arith.constant 0 : i32
    %c0_i32_1 = arith.constant 0 : i32
    return %c0_i32, %c0_i32_0 : i32, i32
  }
  func.func @transform_17(%arg0: i32) -> (i32, i32) {
    %c0_i32 = arith.constant 0 : i32
    %c0_i32_0 = arith.constant 0 : i32
    %c0_i32_1 = arith.constant 0 : i32
    return %c0_i32, %c0_i32_0 : i32, i32
  }
  func.func @transform_18(%arg0: i32) -> (i32, i32) {
    %c0_i32 = arith.constant 0 : i32
    %c0_i32_0 = arith.constant 0 : i32
    %c0_i32_1 = arith.constant 0 : i32
    return %c0_i32, %c0_i32_0 : i32, i32
  }
  func.func @transform_19(%arg0: i32) -> (i32, i32) {
    %c0_i32 = arith.constant 0 : i32
    %c0_i32_0 = arith.constant 0 : i32
    %c0_i32_1 = arith.constant 0 : i32
    return %c0_i32, %c0_i32_0 : i32, i32
  }
  func.func @transform_20(%arg0: i32) -> (i32, i32) {
    %c0_i32 = arith.constant 0 : i32
    %c0_i32_0 = arith.constant 0 : i32
    %c0_i32_1 = arith.constant 0 : i32
    return %c0_i32, %c0_i32_0 : i32, i32
  }
  func.func @transform_21(%arg0: i32) -> (i32, i32) {
    %c0_i32 = arith.constant 0 : i32
    %c0_i32_0 = arith.constant 0 : i32
    %c0_i32_1 = arith.constant 0 : i32
    return %c0_i32, %c0_i32_0 : i32, i32
  }
  func.func @transform_22(%arg0: i32) -> (i32, i32) {
    %c0_i32 = arith.constant 0 : i32
    %c0_i32_0 = arith.constant 0 : i32
    %c0_i32_1 = arith.constant 0 : i32
    return %c0_i32, %c0_i32_0 : i32, i32
  }
  func.func @transform_23(%arg0: i32) -> (i32, i32) {
    %c0_i32 = arith.constant 0 : i32
    %c0_i32_0 = arith.constant 0 : i32
    %c0_i32_1 = arith.constant 0 : i32
    return %c0_i32, %c0_i32_0 : i32, i32
  }
  func.func @transform_24(%arg0: i32) -> (i32, i32) {
    %c0_i32 = arith.constant 0 : i32
    %c0_i32_0 = arith.constant 0 : i32
    %c0_i32_1 = arith.constant 0 : i32
    return %c0_i32, %c0_i32_0 : i32, i32
  }
  func.func @transform_25(%arg0: i32) -> (i32, i32) {
    %c0_i32 = arith.constant 0 : i32
    %c0_i32_0 = arith.constant 0 : i32
    %c0_i32_1 = arith.constant 0 : i32
    return %c0_i32, %c0_i32_0 : i32, i32
  }
  func.func @transform_26(%arg0: i32) -> (i32, i32) {
    %c0_i32 = arith.constant 0 : i32
    %c0_i32_0 = arith.constant 0 : i32
    %c0_i32_1 = arith.constant 0 : i32
    return %c0_i32, %c0_i32_0 : i32, i32
  }
  func.func @transform_27(%arg0: i32) -> (i32, i32) {
    %c0_i32 = arith.constant 0 : i32
    %c0_i32_0 = arith.constant 0 : i32
    %c0_i32_1 = arith.constant 0 : i32
    return %c0_i32, %c0_i32_0 : i32, i32
  }
  func.func @transform_28(%arg0: i32) -> (i32, i32) {
    %c0_i32 = arith.constant 0 : i32
    %c0_i32_0 = arith.constant 0 : i32
    %c0_i32_1 = arith.constant 0 : i32
    return %c0_i32, %c0_i32_0 : i32, i32
  }
  func.func @transform_29(%arg0: i32) -> (i32, i32) {
    %c0_i32 = arith.constant 0 : i32
    %c0_i32_0 = arith.constant 0 : i32
    %c0_i32_1 = arith.constant 0 : i32
    return %c0_i32, %c0_i32_0 : i32, i32
  }
  func.func @transform_30(%arg0: i32) -> (i32, i32, i32) {
    %c0_i32 = arith.constant 0 : i32
    %c0_i32_0 = arith.constant 0 : i32
    %c0_i32_1 = arith.constant 0 : i32
    return %arg0, %c0_i32, %c0_i32_0 : i32, i32, i32
  }
}

</mosaic_0001>

<bundles_post_ra>
// kernel: tpu_custom_call.1
= control target key start
LH: loop header
LB: loop body
LE: loop exit
PB: predicated region body
PF: predicated region fallthrough
CT: control target
= control target key end

     0   :  { %s4402_s6 = smov 1   ;;  %s4403_s10 = smov 2   ;;  %s5476_s0 = inlined_call_operand.smem [shape: u32[31], index: -1, kind: input, shape index: {}] }
   0x1   :  { %s4465_s5 = sld [smem:[%s5476_s0]]   ;;  %s4404_s14 = smov 3  }
   0x2   :  { %s4470_s9 = sld [smem:[%s5476_s0 + %s4402_s6]]   ;;  %s4405_s18 = smov 4  }
   0x3   :  { %s4475_s13 = sld [smem:[%s5476_s0 + %s4403_s10]]   ;;  %s4406_s22 = smov 5  }
   0x4   :  { %s4480_s17 = sld [smem:[%s5476_s0 + %s4404_s14]]   ;;  %s4407_s26 = smov 6  }
   0x5   :  { %s4485_s21 = sld [smem:[%s5476_s0 + %s4405_s18]]   ;;  %s4408_s30 = smov 7  }
   0x6   :  { %s4490_s25 = sld [smem:[%s5476_s0 + %s4406_s22]]   ;;  %s4409_s4 = smov 8  }
   0x7   :  { %5488 = sst [smem:[#allocation36_spill]] %s4465_s5  ;;  %s4410_s10 = smov 9  }
   0x8   :  { %5489 = sst [smem:[#allocation37_spill]] %s4470_s9  ;;  %s4411_s15 = smov 10  }
   0x9   :  { %5490 = sst [smem:[#allocation38_spill]] %s4475_s13  ;;  %s4412_s20 = smov 11  }
   0xa   :  { %5491 = sst [smem:[#allocation39_spill]] %s4480_s17  ;;  %s4414_s1 = smov 13  }
   0xb   :  { %5492 = sst [smem:[#allocation40_spill]] %s4485_s21  ;;  %s4415_s7 = smov 14  }
   0xc   :  { %5493 = sst [smem:[#allocation41_spill]] %s4490_s25  ;;  %s4417_s22 = smov 16  }
   0xd   :  { %s4495_s29 = sld [smem:[%s5476_s0 + %s4407_s26]]   ;;  %s4413_s26 = smov 12  }
   0xe   :  { %s4500_s3 = sld [smem:[%s5476_s0 + %s4408_s30]]   ;;  %s4418_s28 = smov 17  }
   0xf   :  { %s4505_s8 = sld [smem:[%s5476_s0 + %s4409_s4]]  }
  0x10   :  { %s4510_s14 = sld [smem:[%s5476_s0 + %s4410_s10]]  }
  0x11   :  { %s4515_s19 = sld [smem:[%s5476_s0 + %s4411_s15]]   ;;  %s4416_s15 = smov 15  }
  0x12   :  { %s4520_s24 = sld [smem:[%s5476_s0 + %s4412_s20]]  }
  0x13   :  { %s4525_s30 = sld [smem:[%s5476_s0 + %s4413_s26]]  }
  0x14   :  { %5494 = sst [smem:[#allocation42_spill]] %s4500_s3 }
  0x15   :  { %5495 = sst [smem:[#allocation43_spill]] %s4505_s8 }
  0x16   :  { %5496 = sst [smem:[#allocation44_spill]] %s4510_s14 }
  0x17   :  { %s4530_s6 = sld [smem:[%s5476_s0 + %s4414_s1]]  }
  0x18   :  { %5497 = sst [smem:[#allocation45_spill]] %s4520_s24 }
  0x19   :  { %s4535_s12 = sld [smem:[%s5476_s0 + %s4415_s7]]   ;;  %s4419_s7 = smov 18  }
  0x1a   :  { %s4540_s20 = sld [smem:[%s5476_s0 + %s4416_s15]]   ;;  %s4420_s15 = smov 19  }
  0x1b   :  { %s4545_s27 = sld [smem:[%s5476_s0 + %s4417_s22]]   ;;  %s4421_s22 = smov 20  }
  0x1c   :  { %s4550_s4 = sld [smem:[%s5476_s0 + %s4418_s28]]   ;;  %s4422_s28 = smov 21  }
  0x1d   :  { %5498 = sst [smem:[#allocation46_spill]] %s4530_s6 }
  0x1e   :  { %s4555_s6 = sld [smem:[%s5476_s0 + %s4419_s7]]   ;;  %s4423_s7 = smov 22  }
  0x1f   :  { %5499 = sst [smem:[#allocation47_spill]] %s4535_s12 }
  0x20   :  { %5500 = sst [smem:[#allocation48_spill]] %s4540_s20 }
  0x21   :  { %s4560_s20 = sld [smem:[%s5476_s0 + %s4420_s15]]   ;;  %s4424_s15 = smov 23  }
  0x22   :  { %5501 = sst [smem:[#allocation49_spill]] %s4550_s4 }
  0x23   :  { %s4565_s9 = sld [smem:[%s5476_s0 + %s4421_s22]]   ;;  %s4425_s22 = smov 24  }
  0x24   :  { %5502 = sst [smem:[#allocation50_spill]] %s4555_s6 }
  0x25   :  { %s4570_s4 = sld [smem:[%s5476_s0 + %s4422_s28]]   ;;  %s4426_s28 = smov 25  }
  0x26   :  { %s4575_s24 = sld [smem:[%s5476_s0 + %s4423_s7]]   ;;  %s4427_s7 = smov 26  }
  0x27   :  { %5503 = sst [smem:[#allocation51_spill]] %s4560_s20 }
  0x28   :  { %s4580_s20 = sld [smem:[%s5476_s0 + %s4424_s15]]   ;;  %s4428_s15 = smov 27  }
  0x29   :  { %5504 = sst [smem:[#allocation52_spill]] %s4565_s9 }
  0x2a   :  { %s4585_s9 = sld [smem:[%s5476_s0 + %s4425_s22]]   ;;  %s4429_s22 = smov 28  }
  0x2b   :  { %5505 = sst [smem:[#allocation53_spill]] %s4570_s4 }
  0x2c   :  { %s4590_s4 = sld [smem:[%s5476_s0 + %s4426_s28]]   ;;  %s4430_s28 = smov 29  }
  0x2d   :  { %s4595_s14 = sld [smem:[%s5476_s0 + %s4427_s7]]   ;;  %s4431_s7 = smov 30  }
  0x2e   :  { %s4600_s13 = sld [smem:[%s5476_s0 + %s4428_s15]]  }
  0x2f   :  { %s4605_s3 = sld [smem:[%s5476_s0 + %s4429_s22]]  }
  0x30   :  { %5506 = sst [smem:[#allocation54_spill]] %s4585_s9 }
  0x31   :  { %s4610_s25 = sld [smem:[%s5476_s0 + %s4430_s28]]  }
  0x32   :  { %5507 = sst [smem:[#allocation55_spill]] %s4590_s4 }
  0x33   :  { %s4615_s5 = sld [smem:[%s5476_s0 + %s4431_s7]]  }
  0x35   :  { %5508 = sst [smem:[#allocation56_spill]] %s4605_s3 }
  0x37   :  { %5509 = sst [smem:[#allocation57_spill]] %s4610_s25 }
  0x39   :  { %5510 = sst [smem:[#allocation58_spill]] %s4615_s5 }
  0x3a   :  { %66 = vsyncpa [#allocation3], 0 }
  0x3b   :  { %68 = vsyncpa [#allocation3 + $0x1], 0 }
  0x3c   :  { %69 = vsyncpa [#allocation6], 0 }
  0x3d   :  { %70 = vsyncpa [#allocation9], 0 }
  0x3e   :  { %71 = vsyncpa [#allocation12], 0 }
  0x3f   :  { %72 = vsyncpa [#allocation15], 0 }
  0x40   :  { %73 = vsyncpa [#allocation18], 0 }
  0x41   :  { %74 = vsyncpa [#allocation21], 0 }
  0x42   :  { %75 = vsyncpa [#allocation24], 0 }
  0x43   :  { %76 = vsyncpa [#allocation4], 0 }
  0x44   :  { %78 = vsyncpa [#allocation4 + $0x1], 0  ;;  %s4617_s15 = smov 0   ;;  %s4619_s16 = smov 0  }
  0x45   :  { %s4621_s18 = smov 0   ;;  %s4623_s22 = smov 0  }
  0x46 LB: > { %s5511_s12 = sld [smem:[#allocation47_spill]]  ;;  %s4641_s23 = sadd.s32 4294967295, %s4400_s22   ;;  %s4392_s16 = sphi %s4619_s16, %s5560_s16   ;;  %s4388_s15 = sphi %s4617_s15, %s5559_s15   ;;  %s4400_s22 = sphi %s4623_s22, %s5562_s22   ;;  %s4396_s18 = sphi %s4621_s18, %s5561_s18  }
  0x47   : > { %s5512_s9 = sld [smem:[#allocation54_spill]]  ;;  %p3394_p0 = scmp.ge.s32.totalorder %s4400_s22, 1 }
  0x48   : > { %s5513_s8 = sld [smem:[#allocation43_spill]]  ;;  %p5487_p1 = scmp.eq.s32.totalorder %s4641_s23, 0 }
  0x49   : > { %s5514_s6 = sld [smem:[#allocation50_spill]]  ;;  %p765_p2 = scmp.lt.s32.totalorder %s4400_s22, 3 }
  0x4a   : > { %s5515_s4 = sld [smem:[#allocation55_spill]]  ;;  %s4432_s28 = smov [#allocation5]  }
  0x4b   : > { %s5516_s21 = sld [smem:[#allocation40_spill]]  ;;  %p4646_p3 = pnand %p3394_p0, %p765_p2 }
  0x4c   : > { %s4650_s1 = sshll.u32 %s4432_s28, 4  ;;  %s844_s10 = sshll.u32 %s4525_s30, 4  ;;  %s779_s1 = int_to_ptr.vmem [resolvable:$true] %s4650_s1  ;;  %s4686_s10 = int_to_ptr.hbm [resolvable:$true] %s844_s10 }
  0x4d   : > { %s5517_s26 = scalar_select %p4646_p3, 1, 0 }
  0x4e   : > { %p3632_p4 = pneg %p4646_p3  ;;  %s810_s2 = sshll.u32 %s5513_s8, 4  ;;  %s4663_s2 = int_to_ptr.hbm [resolvable:$true] %s810_s2 }
  0x4f   : > { %5518 = sst [smem:[#allocation59_spill]] %s5517_s26  ;;  %s4433_s11 = smov [#allocation8]  }
  0x50   : > { %p4659_p6 = pnand %p3632_p4, %p5487_p1  ;;  %s4666_s28 = sshll.u32 %s4433_s11, 4  ;;  %s813_s28 = int_to_ptr.vmem [resolvable:$true] %s4666_s28 }
  0x51   : > { %s776_s0 = sshll.u32 %s5516_s21, 4  ;;  %s3863_s26 = scalar_lea.hbm %s5516_s21, 16  ;;  %s4638_s0 = int_to_ptr.hbm [resolvable:$true] %s776_s0 }
  0x52   : > { %s3856_s5 = sshra.s32 %s4638_s0, 4  ;;  %p4671_p8 = pneg %p4659_p6  ;;  %s3857_s5 = int_to_ptr.hbm [resolvable:$true] %s3856_s5 }
  0x53   : > { %s3858_s25 = scalar_lea.hbm %s3857_s5, 16  ;;  %p3864_p11 = scmp.lt.s32.totalorder %s3857_s5, %s5516_s21 }
  0x54   : > { %p3859_p7 = scmp.ne.s32.totalorder %s3857_s5, %s3858_s25  ;;  %p3865_p12 = scmp.lt.s32.totalorder %s3863_s26, %s3858_s25 }
  0x56   : > { %p3861_p9 = pnand %p4671_p8, %p3859_p7  ;;  %p3866_p13 = por %p3865_p12, %p3864_p11 }
  0x58   : > { %p3862_p10 = pneg %p3861_p9 }
  0x5a   : > { %p3867_p0 = pnand %p3866_p13, %p3862_p10 }
  0x5c   : > { %3870 = shalt.err (!%p3867_p0)
}
  0x5d   : > { %s4434_s11 = smov 64   ;;  %s4435_s17 = smov 4  }
  0x5e   : > { %3635 = dma.hbm_to_vmem [thread:$0]  (!%p4659_p6), %s4638_s0, 256, %s779_s1, [#allocation6], %s4434_s11, %s4434_s11, %s4435_s17  }
  0x5f   : > { %s3886_s5 = sshra.s32 %s4663_s2, 4  ;;  %s3893_s26 = scalar_lea.hbm %s5513_s8, 16  ;;  %s3887_s5 = int_to_ptr.hbm [resolvable:$true] %s3886_s5 }
  0x60   : > { %s3888_s25 = scalar_lea.hbm %s3887_s5, 16  ;;  %p3894_p9 = scmp.lt.s32.totalorder %s3887_s5, %s5513_s8 }
  0x61   : > { %p3889_p2 = scmp.ne.s32.totalorder %s3887_s5, %s3888_s25  ;;  %p3895_p10 = scmp.lt.s32.totalorder %s3893_s26, %s3888_s25 }
  0x63   : > { %p3891_p4 = pnand %p3889_p2, %p4671_p8  ;;  %p3896_p11 = por %p3895_p10, %p3894_p9 }
  0x65   : > { %p3892_p7 = pneg %p3891_p4 }
  0x67   : > { %p3897_p12 = pnand %p3896_p11, %p3892_p7 }
  0x69   : > { %3900 = shalt.err (!%p3897_p12)
}
  0x6a   : > { %3641 = dma.hbm_to_vmem [thread:$0]  (!%p4659_p6), %s4663_s2, 256, %s813_s28, [#allocation9], %s4434_s11, %s4434_s11, %s4435_s17  }
  0x6b   : > { %s878_s0 = sshll.u32 %s4545_s27, 4  ;;  %s4436_s1 = smov [#allocation11]   ;;  %s4700_s0 = int_to_ptr.hbm [resolvable:$true] %s878_s0 }
  0x6c   : > { %s846_s21 = sshll.u32 %s4436_s1, 4  ;;  %s3916_s5 = sshra.s32 %s4686_s10, 4  ;;  %s847_s21 = int_to_ptr.vmem [resolvable:$true] %s846_s21  ;;  %s3917_s5 = int_to_ptr.hbm [resolvable:$true] %s3916_s5 }
  0x6d   : > { %s3918_s25 = scalar_lea.hbm %s3917_s5, 16  ;;  %s3923_s26 = scalar_lea.hbm %s4525_s30, 16 }
  0x6e   : > { %p3919_p13 = scmp.ne.s32.totalorder %s3917_s5, %s3918_s25  ;;  %p3924_p4 = scmp.lt.s32.totalorder %s3917_s5, %s4525_s30 }
  0x6f   : > { %p3925_p7 = scmp.lt.s32.totalorder %s3923_s26, %s3918_s25 }
  0x70   : > { %p3921_p0 = pnand %p3919_p13, %p4671_p8 }
  0x71   : > { %p3926_p9 = por %p3925_p7, %p3924_p4 }
  0x72   : > { %p3922_p2 = pneg %p3921_p0 }
  0x74   : > { %p3927_p10 = pnand %p3926_p9, %p3922_p2 }
  0x76   : > { %3930 = shalt.err (!%p3927_p10)
}
  0x77   : > { %3647 = dma.hbm_to_vmem [thread:$0]  (!%p4659_p6), %s4686_s10, 256, %s847_s21, [#allocation12], %s4434_s11, %s4434_s11, %s4435_s17  }
  0x78   : > { %s4437_s2 = smov [#allocation14]   ;;  %s919_s1 = sshll.u32 %s4575_s24, 4  ;;  %s4714_s1 = int_to_ptr.hbm [resolvable:$true] %s919_s1 }
  0x79   : > { %s880_s28 = sshll.u32 %s4437_s2, 4  ;;  %s3946_s5 = sshra.s32 %s4700_s0, 4  ;;  %s881_s28 = int_to_ptr.vmem [resolvable:$true] %s880_s28  ;;  %s3947_s5 = int_to_ptr.hbm [resolvable:$true] %s3946_s5 }
  0x7a   : > { %s3948_s25 = scalar_lea.hbm %s3947_s5, 16  ;;  %s3953_s26 = scalar_lea.hbm %s4545_s27, 16 }
  0x7b   : > { %p3949_p11 = scmp.ne.s32.totalorder %s3947_s5, %s3948_s25  ;;  %p3954_p0 = scmp.lt.s32.totalorder %s3947_s5, %s4545_s27 }
  0x7c   : > { %p3955_p2 = scmp.lt.s32.totalorder %s3953_s26, %s3948_s25 }
  0x7d   : > { %p3951_p12 = pnand %p3949_p11, %p4671_p8 }
  0x7e   : > { %p3956_p4 = por %p3955_p2, %p3954_p0 }
  0x7f   : > { %p3952_p13 = pneg %p3951_p12 }
  0x81   : > { %p3957_p7 = pnand %p3956_p4, %p3952_p13 }
  0x83   : > { %3960 = shalt.err (!%p3957_p7)
}
  0x84   : > { %3653 = dma.hbm_to_vmem [thread:$0]  (!%p4659_p6), %s4700_s0, 256, %s881_s28, [#allocation15], %s4434_s11, %s4434_s11, %s4435_s17  }
  0x85   : > { %s943_s21 = sshll.u32 %s5512_s9, 4  ;;  %s4438_s10 = smov [#allocation17]   ;;  %s4728_s21 = int_to_ptr.hbm [resolvable:$true] %s943_s21 }
  0x86   : > { %s921_s2 = sshll.u32 %s4438_s10, 4  ;;  %s3976_s5 = sshra.s32 %s4714_s1, 4  ;;  %s922_s2 = int_to_ptr.vmem [resolvable:$true] %s921_s2  ;;  %s3977_s5 = int_to_ptr.hbm [resolvable:$true] %s3976_s5 }
  0x87   : > { %s3978_s25 = scalar_lea.hbm %s3977_s5, 1  ;;  %s3983_s26 = scalar_lea.hbm %s4575_s24, 1 }
  0x88   : > { %p3979_p9 = scmp.ne.s32.totalorder %s3977_s5, %s3978_s25  ;;  %p3984_p12 = scmp.lt.s32.totalorder %s3977_s5, %s4575_s24 }
  0x89   : > { %p3985_p13 = scmp.lt.s32.totalorder %s3983_s26, %s3978_s25 }
  0x8a   : > { %p3981_p10 = pnand %p3979_p9, %p4671_p8 }
  0x8b   : > { %p3986_p0 = por %p3985_p13, %p3984_p12 }
  0x8c   : > { %p3982_p11 = pneg %p3981_p10 }
  0x8e   : > { %p3987_p2 = pnand %p3986_p0, %p3982_p11 }
  0x90   : > { %3990 = shalt.err (!%p3987_p2)
}
  0x91   : > { %3659 = dma.hbm_to_vmem [thread:$0]  (!%p4659_p6), %s4714_s1, 16, %s922_s2, [#allocation18]  }
  0x92   : > { %s4439_s0 = smov [#allocation20]   ;;  %s966_s10 = sshll.u32 %s4595_s14, 4  ;;  %s4739_s10 = int_to_ptr.hbm [resolvable:$true] %s966_s10 }
  0x93   : > { %s945_s28 = sshll.u32 %s4439_s0, 4  ;;  %s4006_s5 = sshra.s32 %s4728_s21, 4  ;;  %s946_s28 = int_to_ptr.vmem [resolvable:$true] %s945_s28  ;;  %s4007_s5 = int_to_ptr.hbm [resolvable:$true] %s4006_s5 }
  0x94   : > { %s4008_s25 = scalar_lea.hbm %s4007_s5, 1  ;;  %s4013_s26 = scalar_lea.hbm %s5512_s9, 1 }
  0x95   : > { %p4009_p4 = scmp.ne.s32.totalorder %s4007_s5, %s4008_s25  ;;  %p4014_p10 = scmp.lt.s32.totalorder %s4007_s5, %s5512_s9 }
  0x96   : > { %p4015_p11 = scmp.lt.s32.totalorder %s4013_s26, %s4008_s25 }
  0x97   : > { %p4011_p7 = pnand %p4009_p4, %p4671_p8 }
  0x98   : > { %p4016_p12 = por %p4015_p11, %p4014_p10 }
  0x99   : > { %p4012_p9 = pneg %p4011_p7 }
  0x9b   : > { %p4017_p13 = pnand %p4016_p12, %p4012_p9 }
  0x9d   : > { %4020 = shalt.err (!%p4017_p13)
}
  0x9e   : > { %3665 = dma.hbm_to_vmem [thread:$0]  (!%p4659_p6), %s4728_s21, 16, %s946_s28, [#allocation21]  }
  0x9f   : > { %s793_s1 = sshll.u32 %s4495_s29, 4  ;;  %s4440_s2 = smov [#allocation23]   ;;  %s4750_s1 = int_to_ptr.hbm [resolvable:$true] %s793_s1 }
  0xa0   : > { %s968_s0 = sshll.u32 %s4440_s2, 4  ;;  %s4036_s5 = sshra.s32 %s4739_s10, 4  ;;  %s969_s0 = int_to_ptr.vmem [resolvable:$true] %s968_s0  ;;  %s4037_s5 = int_to_ptr.hbm [resolvable:$true] %s4036_s5 }
  0xa1   : > { %s4038_s25 = scalar_lea.hbm %s4037_s5, 16  ;;  %s4043_s26 = scalar_lea.hbm %s4595_s14, 16 }
  0xa2   : > { %p4039_p0 = scmp.ne.s32.totalorder %s4037_s5, %s4038_s25  ;;  %p4044_p7 = scmp.lt.s32.totalorder %s4037_s5, %s4595_s14 }
  0xa3   : > { %p4045_p9 = scmp.lt.s32.totalorder %s4043_s26, %s4038_s25 }
  0xa4   : > { %p4041_p2 = pnand %p4039_p0, %p4671_p8 }
  0xa5   : > { %p4046_p10 = por %p4045_p9, %p4044_p7 }
  0xa6   : > { %p4042_p4 = pneg %p4041_p2 }
  0xa8   : > { %p4047_p11 = pnand %p4046_p10, %p4042_p4 }
  0xaa   : > { %4050 = shalt.err (!%p4047_p11)
}
  0xab   : > { %3671 = dma.hbm_to_vmem [thread:$0]  (!%p4659_p6), %s4739_s10, 256, %s969_s0, [#allocation24], %s4434_s11, %s4434_s11, %s4435_s17  }
  0xac   : > { %s4441_s21 = smov [#allocation7]   ;;  %s827_s2 = sshll.u32 %s4515_s19, 4  ;;  %s4764_s2 = int_to_ptr.hbm [resolvable:$true] %s827_s2 }
  0xad   : > { %s795_s28 = sshll.u32 %s4441_s21, 4  ;;  %s4066_s5 = sshra.s32 %s4750_s1, 4  ;;  %s796_s28 = int_to_ptr.vmem [resolvable:$true] %s795_s28  ;;  %s4067_s5 = int_to_ptr.hbm [resolvable:$true] %s4066_s5 }
  0xae   : > { %s4068_s25 = scalar_lea.hbm %s4067_s5, 16  ;;  %s4073_s26 = scalar_lea.hbm %s4495_s29, 16 }
  0xaf   : > { %p4069_p12 = scmp.ne.s32.totalorder %s4067_s5, %s4068_s25  ;;  %p4074_p2 = scmp.lt.s32.totalorder %s4067_s5, %s4495_s29 }
  0xb0   : > { %p4075_p4 = scmp.lt.s32.totalorder %s4073_s26, %s4068_s25 }
  0xb1   : > { %p4071_p13 = pnand %p4069_p12, %p4671_p8 }
  0xb2   : > { %p4076_p7 = por %p4075_p4, %p4074_p2 }
  0xb3   : > { %p4072_p0 = pneg %p4071_p13 }
  0xb5   : > { %p4077_p9 = pnand %p4076_p7, %p4072_p0 }
  0xb7   : > { %4080 = shalt.err (!%p4077_p9)
}
  0xb8   : > { %3638 = dma.hbm_to_vmem [thread:$0]  (!%p4659_p6), %s4750_s1, 256, %s796_s28, [#allocation6], %s4434_s11, %s4434_s11, %s4435_s17  }
  0xb9   : > { %s861_s10 = sshll.u32 %s5511_s12, 4  ;;  %s4442_s0 = smov [#allocation10]   ;;  %s4778_s10 = int_to_ptr.hbm [resolvable:$true] %s861_s10 }
  0xba   : > { %s829_s21 = sshll.u32 %s4442_s0, 4  ;;  %s4096_s5 = sshra.s32 %s4764_s2, 4  ;;  %s830_s21 = int_to_ptr.vmem [resolvable:$true] %s829_s21  ;;  %s4097_s5 = int_to_ptr.hbm [resolvable:$true] %s4096_s5 }
  0xbb   : > { %s4098_s25 = scalar_lea.hbm %s4097_s5, 16  ;;  %s4103_s26 = scalar_lea.hbm %s4515_s19, 16 }
  0xbc   : > { %p4099_p10 = scmp.ne.s32.totalorder %s4097_s5, %s4098_s25  ;;  %p4104_p13 = scmp.lt.s32.totalorder %s4097_s5, %s4515_s19 }
  0xbd   : > { %p4105_p0 = scmp.lt.s32.totalorder %s4103_s26, %s4098_s25 }
  0xbe   : > { %p4101_p11 = pnand %p4099_p10, %p4671_p8 }
  0xbf   : > { %p4106_p2 = por %p4105_p0, %p4104_p13 }
  0xc0   : > { %p4102_p12 = pneg %p4101_p11 }
  0xc2   : > { %p4107_p4 = pnand %p4106_p2, %p4102_p12 }
  0xc4   : > { %4110 = shalt.err (!%p4107_p4)
}
  0xc5   : > { %3644 = dma.hbm_to_vmem [thread:$0]  (!%p4659_p6), %s4764_s2, 256, %s830_s21, [#allocation9], %s4434_s11, %s4434_s11, %s4435_s17  }
  0xc6   : > { %s4443_s1 = smov [#allocation13]   ;;  %s895_s0 = sshll.u32 %s5514_s6, 4  ;;  %s4792_s0 = int_to_ptr.hbm [resolvable:$true] %s895_s0 }
  0xc7   : > { %s863_s28 = sshll.u32 %s4443_s1, 4  ;;  %s4126_s5 = sshra.s32 %s4778_s10, 4  ;;  %s864_s28 = int_to_ptr.vmem [resolvable:$true] %s863_s28  ;;  %s4127_s5 = int_to_ptr.hbm [resolvable:$true] %s4126_s5 }
  0xc8   : > { %s4128_s25 = scalar_lea.hbm %s4127_s5, 16  ;;  %s4133_s26 = scalar_lea.hbm %s5511_s12, 16 }
  0xc9   : > { %p4129_p7 = scmp.ne.s32.totalorder %s4127_s5, %s4128_s25  ;;  %p4134_p11 = scmp.lt.s32.totalorder %s4127_s5, %s5511_s12 }
  0xca   : > { %p4135_p12 = scmp.lt.s32.totalorder %s4133_s26, %s4128_s25 }
  0xcb   : > { %p4131_p9 = pnand %p4129_p7, %p4671_p8 }
  0xcc   : > { %p4136_p13 = por %p4135_p12, %p4134_p11 }
  0xcd   : > { %p4132_p10 = pneg %p4131_p9 }
  0xcf   : > { %p4137_p0 = pnand %p4136_p13, %p4132_p10 }
  0xd1   : > { %4140 = shalt.err (!%p4137_p0)
}
  0xd2   : > { %3650 = dma.hbm_to_vmem [thread:$0]  (!%p4659_p6), %s4778_s10, 256, %s864_s28, [#allocation12], %s4434_s11, %s4434_s11, %s4435_s17  }
  0xd3   : > { %s931_s2 = sshll.u32 %s4580_s20, 4  ;;  %s4444_s21 = smov [#allocation16]   ;;  %s4806_s2 = int_to_ptr.hbm [resolvable:$true] %s931_s2 }
  0xd4   : > { %s897_s1 = sshll.u32 %s4444_s21, 4  ;;  %s4156_s5 = sshra.s32 %s4792_s0, 4  ;;  %s898_s1 = int_to_ptr.vmem [resolvable:$true] %s897_s1  ;;  %s4157_s5 = int_to_ptr.hbm [resolvable:$true] %s4156_s5 }
  0xd5   : > { %s4158_s25 = scalar_lea.hbm %s4157_s5, 16  ;;  %s4163_s26 = scalar_lea.hbm %s5514_s6, 16 }
  0xd6   : > { %p4159_p2 = scmp.ne.s32.totalorder %s4157_s5, %s4158_s25  ;;  %p4164_p9 = scmp.lt.s32.totalorder %s4157_s5, %s5514_s6 }
  0xd7   : > { %p4165_p10 = scmp.lt.s32.totalorder %s4163_s26, %s4158_s25 }
  0xd8   : > { %p4161_p4 = pnand %p4159_p2, %p4671_p8 }
  0xd9   : > { %p4166_p11 = por %p4165_p10, %p4164_p9 }
  0xda   : > { %p4162_p7 = pneg %p4161_p4 }
  0xdc   : > { %p4167_p12 = pnand %p4166_p11, %p4162_p7 }
  0xde   : > { %4170 = shalt.err (!%p4167_p12)
}
  0xdf   : > { %3656 = dma.hbm_to_vmem [thread:$0]  (!%p4659_p6), %s4792_s0, 256, %s898_s1, [#allocation15], %s4434_s11, %s4434_s11, %s4435_s17  }
  0xe0   : > { %s4445_s10 = smov [#allocation19]   ;;  %s955_s21 = sshll.u32 %s5515_s4, 4  ;;  %s4820_s21 = int_to_ptr.hbm [resolvable:$true] %s955_s21 }
  0xe1   : > { %s933_s28 = sshll.u32 %s4445_s10, 4  ;;  %s4186_s5 = sshra.s32 %s4806_s2, 4  ;;  %s934_s28 = int_to_ptr.vmem [resolvable:$true] %s933_s28  ;;  %s4187_s5 = int_to_ptr.hbm [resolvable:$true] %s4186_s5 }
  0xe2   : > { %s4188_s25 = scalar_lea.hbm %s4187_s5, 1  ;;  %s4193_s26 = scalar_lea.hbm %s4580_s20, 1 }
  0xe3   : > { %p4189_p13 = scmp.ne.s32.totalorder %s4187_s5, %s4188_s25  ;;  %p4194_p4 = scmp.lt.s32.totalorder %s4187_s5, %s4580_s20 }
  0xe4   : > { %p4195_p7 = scmp.lt.s32.totalorder %s4193_s26, %s4188_s25 }
  0xe5   : > { %p4191_p0 = pnand %p4189_p13, %p4671_p8 }
  0xe6   : > { %p4196_p9 = por %p4195_p7, %p4194_p4 }
  0xe7   : > { %p4192_p2 = pneg %p4191_p0 }
  0xe9   : > { %p4197_p10 = pnand %p4196_p9, %p4192_p2 }
  0xeb   : > { %4200 = shalt.err (!%p4197_p10)
}
  0xec   : > { %3662 = dma.hbm_to_vmem [thread:$0]  (!%p4659_p6), %s4806_s2, 16, %s934_s28, [#allocation18]  }
  0xed   : > { %s981_s17 = sshll.u32 %s4600_s13, 4  ;;  %s4446_s11 = smov [#allocation22]   ;;  %s4831_s17 = int_to_ptr.hbm [resolvable:$true] %s981_s17 }
  0xee   : > { %s957_s0 = sshll.u32 %s4446_s11, 4  ;;  %s4216_s1 = sshra.s32 %s4820_s21, 4  ;;  %s958_s0 = int_to_ptr.vmem [resolvable:$true] %s957_s0  ;;  %s4217_s1 = int_to_ptr.hbm [resolvable:$true] %s4216_s1 }
  0xef   : > { %s4218_s10 = scalar_lea.hbm %s4217_s1, 1  ;;  %s4223_s5 = scalar_lea.hbm %s5515_s4, 1 }
  0xf0   : > { %p4219_p11 = scmp.ne.s32.totalorder %s4217_s1, %s4218_s10  ;;  %p4224_p0 = scmp.lt.s32.totalorder %s4217_s1, %s5515_s4 }
  0xf1   : > { %p4225_p2 = scmp.lt.s32.totalorder %s4223_s5, %s4218_s10 }
  0xf2   : > { %p4221_p12 = pnand %p4219_p11, %p4671_p8 }
  0xf3   : > { %p4226_p4 = por %p4225_p2, %p4224_p0 }
  0xf4   : > { %p4222_p13 = pneg %p4221_p12 }
  0xf6   : > { %p4227_p7 = pnand %p4226_p4, %p4222_p13 }
  0xf8   : > { %4230 = shalt.err (!%p4227_p7)
}
  0xf9   : > { %3668 = dma.hbm_to_vmem [thread:$0]  (!%p4659_p6), %s4820_s21, 16, %s958_s0, [#allocation21]  }
  0xfa   : > { %s4447_s2 = smov [#allocation25]   ;;  %s4246_s25 = sshra.s32 %s4831_s17, 4  ;;  %s4247_s25 = int_to_ptr.hbm [resolvable:$true] %s4246_s25 }
  0xfb   : > { %s983_s28 = sshll.u32 %s4447_s2, 4  ;;  %s4248_s26 = scalar_lea.hbm %s4247_s25, 1  ;;  %s984_s28 = int_to_ptr.vmem [resolvable:$true] %s983_s28 }
  0xfc   : > { %p4249_p9 = scmp.ne.s32.totalorder %s4247_s25, %s4248_s26  ;;  %s4253_s11 = scalar_lea.hbm %s4600_s13, 1 }
  0xfd   : > { %p4254_p12 = scmp.lt.s32.totalorder %s4247_s25, %s4600_s13  ;;  %p4255_p13 = scmp.lt.s32.totalorder %s4253_s11, %s4248_s26 }
  0xfe   : > { %p4251_p10 = pnand %p4249_p9, %p4671_p8 }
  0xff   : > { %p4256_p0 = por %p4255_p13, %p4254_p12 }
 0x100   : > { %p4252_p11 = pneg %p4251_p10 }
 0x102   : > { %p4257_p2 = pnand %p4256_p0, %p4252_p11 }
 0x104   : > { %4260 = shalt.err (!%p4257_p2)
}
 0x105   : > { %3674 = dma.hbm_to_vmem [thread:$0]  (!%p4659_p6), %s4831_s17, 16, %s984_s28, [#allocation24]  }
 0x106   : > { %s3393_s3 = sadd.s32 4294967294, %s4400_s22   ;;  %s4851_s21 = sadd.s32 1, %s4400_s22  }
 0x107   : > { %s166_s7 = ssub.s32 %s4400_s22, %s4851_s21  ;;  %s169_s0 = sadd.s32 1, %s4396_s18 }
 0x108   : > { %s5521_s1 = sld [smem:[#allocation39_spill]]  ;;  %p167_p8 = scmp.eq.s32.totalorder %s166_s7, 0 }
 0x109   : > { %p176_p4 = scmp.ne.s32.totalorder %s4396_s18, %s4392_s16  ;;  %p177_p7 = scmp.eq.s32.totalorder %s4400_s22, 0 }
 0x10a   : > { %p182_p9 = scmp.ne.s32.totalorder %s4392_s16, %s4388_s15  ;;  %p752_p11 = scmp.eq.s32.totalorder %s4641_s23, 1 }
 0x10b   : > { %s4862_s10 = scalar_select %p167_p8, %s4396_s18, %s169_s0  }
 0x10c   : > { %p4864_p10 = por %p177_p7, %p176_p4  ;;  %p4870_p6 = por %p5487_p1, %p182_p9 }
 0x10d   : > { %p758_p12 = scmp.eq.s32.totalorder %s3393_s3, 1  ;;  %p3697_p13 = scmp.lt.s32.totalorder %s4400_s22, 2 }
 0x10e   : > { %s1021_s2 = sand.u32 1, %s4396_s18   ;;  %p4877_p0 = por %p752_p11, %p176_p4 }
 0x10f   : > { %p4881_p2 = por %p758_p12, %p182_p9  ;;  %s3410_s26 = sshll.u32 %s1021_s2, 3 }
 0x110   : > { %s3411_s11 = sshll.u32 %s4400_s22, 3  ;;  %s1025_s0 = scalar_lea.vmem [#allocation2], %s3410_s26 }
 0x111   : > { %s5525_s25 = scalar_select %p4881_p2, 1, 0 }
 0x112   : > { %s1029_s7 = scalar_lea.hbm %s5521_s1, %s3411_s11  ;;  %s1033_s4 = sshll.u32 %s1025_s0, 4  ;;  %s1034_s4 = int_to_ptr.vmem [resolvable:$true] %s1033_s4 }
 0x113   : > { %s1031_s6 = sshll.u32 %s1029_s7, 4  ;;  %p4889_p8 = pnand %p3697_p13, %p4864_p10  ;;  %s1032_s6 = int_to_ptr.hbm [resolvable:$true] %s1031_s6 }
 0x114   : > { %s1022_s8 = scalar_lea.sflag [#allocation3], %s1021_s2  ;;  %s4276_s9 = sshra.s32 %s1032_s6, 4  ;;  %s4277_s9 = int_to_ptr.hbm [resolvable:$true] %s4276_s9 }
 0x115   : > { %s4278_s12 = scalar_lea.hbm %s4277_s9, 8  ;;  %p4280_p7 = pneg %p4889_p8 }
 0x116   : > { %p4279_p4 = scmp.ne.s32.totalorder %s4277_s9, %s4278_s12  ;;  %s4283_s26 = scalar_lea.hbm %s5521_s1, 16 }
 0x117   : > { %p4284_p12 = scmp.lt.s32.totalorder %s4277_s9, %s5521_s1  ;;  %p4285_p5 = scmp.lt.s32.totalorder %s4283_s26, %s4278_s12 }
 0x118   : > { %p4281_p9 = pnand %p4280_p7, %p4279_p4 }
 0x119   : > { %p4286_p1 = por %p4285_p5, %p4284_p12 }
 0x11a   : > { %p4282_p11 = pneg %p4281_p9 }
 0x11c   : > { %p4287_p2 = pnand %p4286_p1, %p4282_p11 }
 0x11e   : > { %4290 = shalt.err (!%p4287_p2)
}
 0x11f   : > { %3678 = dma.hbm_to_vmem [thread:$0]  (!%p4889_p8), %s1032_s6, 128, %s1034_s4, %s1022_s8  }
 0x120   : > { %1042 = sbr.rel (%p4646_p3) target bundleno = 3564 (0xdec), region = 140  ;;  %s4902_s2 = sand.u32 (!%p4646_p3), 1, %s4392_s16  }
 0x121   : > { %s3413_s11 = sshll.u32 (!%p4646_p3), %s4902_s2, 3  ;;  %s1045_s7 = scalar_lea.sflag (!%p4646_p3), [#allocation3], %s4902_s2 }
 0x122   : > { %s4908_s9 = scalar_lea.vmem (!%p4646_p3), [#allocation2], %s3413_s11 }
 0x125   : > { %4351 = dma.done.wait (%p4870_p6), %s1045_s7, 128  }
 0x126   : > { %4353 = vsyncadd (%p4870_p6), %s1045_s7, 4294967168  ;;  %p5528_p1 = scmp.eq.s32.totalorder %s4641_s23, 0 }
 0x128   : > { %4355 = dma.done.wait (%p5528_p1), [#allocation6], 512   ;;  %p5529_p3 = pmov %p5528_p1 }
 0x129   : > { %p5530_p5 = pmov %p5528_p1 }
 0x12a   : > { %4357 = vsyncadd (%p5529_p3), [#allocation6], 4294966784 }
 0x12b   : > { %4359 = dma.done.wait (%p5530_p5), [#allocation9], 512   ;;  %p5531_p10 = pmov %p5528_p1 }
 0x12c   : > { %p5532_p13 = pmov %p5528_p1 }
 0x12d   : > { %4361 = vsyncadd (%p5531_p10), [#allocation9], 4294966784 }
 0x12e   : > { %4363 = dma.done.wait (%p5532_p13), [#allocation12], 512   ;;  %p5533_p2 = pmov %p5528_p1 }
 0x12f   : > { %p5534_p6 = pmov %p5528_p1 }
 0x130   : > { %4365 = vsyncadd (%p5533_p2), [#allocation12], 4294966784 }
 0x131   : > { %4367 = dma.done.wait (%p5534_p6), [#allocation15], 512   ;;  %p5535_p8 = pmov %p5528_p1 }
 0x132   : > { %p5536_p4 = pmov %p5528_p1 }
 0x133   : > { %4369 = vsyncadd (%p5535_p8), [#allocation15], 4294966784 }
 0x134   : > { %4371 = dma.done.wait (%p5536_p4), [#allocation18], 32   ;;  %p5537_p7 = pmov %p5528_p1 }
 0x135   : > { %p5538_p9 = pmov %p5528_p1 }
 0x136   : > { %4373 = vsyncadd (%p5537_p7), [#allocation18], 4294967264 }
 0x137   : > { %4375 = dma.done.wait (%p5538_p9), [#allocation21], 32   ;;  %p5539_p11 = pmov %p5528_p1 }
 0x138   : > { %p5540_p12 = pmov %p5528_p1 }
 0x139   : > { %4377 = vsyncadd (%p5539_p11), [#allocation21], 4294967264 }
 0x13a   : > { %4379 = dma.done.wait (%p5540_p12), [#allocation24], 272  }
 0x13b   : > { %4381 = vsyncadd (%p5528_p1), [#allocation24], 4294967024  ;;  %s5541_s8 = sld [smem:[#allocation36_spill]]  ;;  %p1208_p3 = scmp.lt.s32.totalorder %s4641_s23, 1  ;;  %v3551_v0 = vld [vmem:[#allocation5 + $0x8] sm:$0xff]  ;;  %v3553_v1 = vld [vmem:[#allocation7 + $0x8] sm:$0xff] }
 0x13c   : > { %s5542_s12 = sld [smem:[#allocation41_spill]]  ;;  %v3550_v2 = vld [vmem:[#allocation5] sm:$0xff]  ;;  %v3552_v3 = vld [vmem:[#allocation7] sm:$0xff]  ;;  %1256 = vmatpush.bf16.msra.mxu0 %v3551_v0  ;;  %1289 = vmatpush.bf16.msra.mxu1 %v3553_v1  ;;  %vm1246_vm0 = vcmask 261120   ;;  %s4448_s3 = smov 104   ;;  %v3555_v14 = vld [vmem:[#allocation8 + $0x8] sm:$0xff] }
 0x13d   : > { %s1209_s6 = scalar_select %p1208_p3, %s4641_s23, 1  ;;  %1322 = vmatpush.bf16.msra.mxu2 %v3555_v14  ;;  %v3554_v15 = vld [vmem:[#allocation8] sm:$0xff]  ;;  %v4451_v17 = vmov 1983009808   ;;  %vm1340_vm1 = vcmask 1047556   ;;  %vm1698_vm2 = vcmask 64512  }
 0x13e   : > { %s5543_s17 = sld [smem:[#allocation42_spill]]  ;;  %s4449_s26 = smov 120   ;;  %v1345_v18 = vunpack.c.l.s4 %v4451_v17  ;;  %v4452_v30 = vmov 1934713408   ;;  %vm1830_vm3 = vcmask 1043456   ;;  %vm2027_vm4 = vcmask 130048  }
 0x13f   : > { %s4944_s4 = sshll.u32 %s1209_s6, 3  ;;  %s4450_s5 = smov 112   ;;  %v1369_v31 = vunpack.c.l.s4 %v4452_v30  ;;  %vm2029_vm5 = vcmask 195584   ;;  %vm3057_vm13 = vcmask 523264  }
 0x140   : > { %1257 = vmatpush.bf16.msra.mxu0 %v3550_v2  ;;  %1290 = vmatpush.bf16.msra.mxu1 %v3552_v3  ;;  %v4964_v26 = vunpack.c.0.s8 %v1345_v18  ;;  %s5544_s7 = sld [smem:[#allocation38_spill]] }
 0x141   : > { %s1211_s0 = scalar_lea.vmem %s5541_s8, %s4944_s4  ;;  %1323 = vmatpush.bf16.msra.mxu2 %v3554_v15  ;;  %v4973_v39 = vunpack.c.0.s8 %v1369_v31  ;;  %s5545_s6 = sld [smem:[#allocation44_spill]] }
 0x142   : > { %v4948_v4 = vld [vmem:[%s1211_s0] sm:$0xff]  ;;  %s4455_s0 = smov 8  }
 0x143   : > { %v1225_v5 = vpack.c.bf16 %v4948_v4, %v4948_v4  ;;  %v3800_v6 = vld [vmem:[%s5542_s12] ss:$0 sm:$0xff]  ;;  %s4453_s12 = smov 24  }
 0x144   : > { %v3801_v7 = vld [vmem:[%s5543_s17] ss:$0 sm:$0xff]  ;;  %s4454_s17 = smov 16  }
 0x145   : > { %3440 = vmatmul.msk.bf16.vlgmr.msra.gmra.mxu0 %vm1246_vm0, %v1225_v5  ;;  %3449 = vmatmul.msk.bf16.vlgmr.msra.gmra.mxu1 %vm1246_vm0, %v1225_v5 }
 0x146   : > { %3458 = vmatmul.msk.bf16.vlgmr.msra.gmra.mxu2 %vm1246_vm0, %v1225_v5  ;;  %s1219_s8 = scalar_lea.vmem %s5544_s7, %s4944_s4  ;;  %s5546_s7 = sld [smem:[#allocation45_spill]] }
 0x1c2   : > { %v1259_v8 = vpop.f32.mrf.mxu0  ;;  %v1292_v9 = vpop.f32.mrf.mxu1 }
 0x1c3   : > { %v1260_v10 = vadd.f32 %v3800_v6, %v1259_v8  ;;  %v1293_v11 = vadd.f32 %v3801_v7, %v1292_v9 }
 0x1c5   : > { %1457 = vrot.lane.b32.xlu1 %v1293_v11, %s4448_s3  ;;  %1451 = vrot.lane.b32.xlu0 %v1293_v11, %s4449_s26  ;;  %v1342_v24 = vrot.slane %v1260_v10, 4  ;;  %v1462_v37 = vrot.slane %v1293_v11, 4 }
 0x1c6   : > { %1333 = vrot.lane.b32.xlu2 %v1260_v10, %s4450_s5 }
 0x1ca   : > { %v1294_v12 = vpop.f32.mrf.mxu1  ;;  %v1261_v13 = vpop.f32.mrf.mxu0 }
 0x1cd   : > { %1454 = vrot.lane.b32.xlu0 %v1293_v11, %s4450_s5  ;;  %1330 = vrot.lane.b32.xlu1 %v1260_v10, %s4449_s26 }
 0x1ce   : > { %1336 = vrot.lane.b32.xlu2 %v1260_v10, %s4448_s3 }
 0x220   : > { %v1334_v16 = vpop.permute.xlu2 %1333 }
 0x221   : > { %v1339_v19 = vrot.slane %v1334_v16, 4  ;;  %v1343_v32 = vsel %vm1340_vm1, %v1334_v16, %v1342_v24 }
 0x222   : > { %v1351_v38 = vperm.slane %v1343_v32, %v4964_v26 }
 0x223   : > { %v1341_v27 = vsel %vm1340_vm1, %v1339_v19, %v1260_v10 }
 0x224   : > { %v1347_v34 = vperm.slane %v1341_v27, %v4964_v26  ;;  %v1378_v57 = vrot.slane %v1351_v38, 4 }
 0x226   : > { %v1366_v49 = vrot.slane %v1347_v34, 4 }
 0x228   : > { %v1337_v29 = vpop.permute.xlu2 %1336 }
 0x229   : > { %v1352_v36 = vrot.slane %v1337_v29, 4 }
 0x237   : > { %v1458_v20 = vpop.permute.xlu1 %1457  ;;  %v1452_v21 = vpop.permute.xlu0 %1451 }
 0x238   : > { %v1472_v22 = vrot.slane %v1458_v20, 4  ;;  %v1474_v23 = vrot.slane %v1452_v21, 4 }
 0x23a   : > { %v1475_v25 = vsel %vm1340_vm1, %v1458_v20, %v1474_v23  ;;  %v1473_v28 = vsel %vm1340_vm1, %v1472_v22, %v1452_v21 }
 0x23b   : > { %v1483_v33 = vperm.slane %v1475_v25, %v4964_v26  ;;  %v1479_v35 = vperm.slane %v1473_v28, %v4964_v26 }
 0x23d   : > { %v1496_v46 = vrot.slane %v1483_v33, 4  ;;  %v1484_v50 = vrot.slane %v1479_v35, 4 }
 0x23f   : > { %v1455_v40 = vpop.permute.xlu0 %1454  ;;  %v1331_v41 = vpop.permute.xlu1 %1330 }
 0x240   : > { %v1460_v42 = vrot.slane %v1455_v40, 4  ;;  %v1463_v43 = vsel %vm1340_vm1, %v1455_v40, %v1462_v37  ;;  %v1353_v44 = vsel %vm1340_vm1, %v1352_v36, %v1331_v41  ;;  %v1354_v45 = vrot.slane %v1331_v41, 4 }
 0x241   : > { %v1471_v47 = vperm.slane %v1463_v43, %v4964_v26  ;;  %v1359_v48 = vperm.slane %v1353_v44, %v4964_v26 }
 0x242   : > { %v1461_v51 = vsel %vm1340_vm1, %v1460_v42, %v1293_v11  ;;  %v1355_v52 = vsel %vm1340_vm1, %v1337_v29, %v1354_v45 }
 0x243   : > { %v1467_v53 = vperm.slane %v1461_v51, %v4964_v26  ;;  %v1497_v54 = vsel %vm1340_vm1, %v1496_v46, %v1471_v47  ;;  %v1498_v55 = vrot.slane %v1471_v47, 4  ;;  %v1363_v56 = vperm.slane %v1355_v52, %v4964_v26 }
 0x244   : > { %v1503_v58 = vperm.slane %v1497_v54, %v4973_v39  ;;  %v1364_v59 = vrot.slane %v1359_v48, 4  ;;  %v1367_v60 = vsel %vm1340_vm1, %v1359_v48, %v1366_v49 }
 0x245   : > { %v1485_v61 = vsel %vm1340_vm1, %v1484_v50, %v1467_v53  ;;  %v1486_v62 = vrot.slane %v1467_v53, 4  ;;  %v1499_v63 = vsel %vm1340_vm1, %v1483_v33, %v1498_v55  ;;  %v1375_v0 = vperm.slane %v1367_v60, %v4973_v39 }
 0x246   : > { %v1491_v1 = vperm.slane %v1485_v61, %v4973_v39  ;;  %v1507_v2 = vperm.slane %v1499_v63, %v4973_v39  ;;  %v1512_v3 = vrot.slane %v1503_v58, 4  ;;  %v1365_v5 = vsel %vm1340_vm1, %v1364_v59, %v1347_v34 }
 0x247   : > { %v1487_v6 = vsel %vm1340_vm1, %v1479_v35, %v1486_v62  ;;  %v1371_v7 = vperm.slane %v1365_v5, %v4973_v39  ;;  %v1376_v8 = vrot.slane %v1363_v56, 4  ;;  %v1379_v9 = vsel %vm1340_vm1, %v1363_v56, %v1378_v57 }
 0x248   : > { %v1495_v10 = vperm.slane %v1487_v6, %v4973_v39  ;;  %v1508_v11 = vrot.slane %v1491_v1, 4  ;;  %v1513_v12 = vsel %vm1340_vm1, 0.0, %v1512_v3  ;;  %v1514_v13 = vrot.slane %v1507_v2, 4 }
 0x249   : > { %v1377_v14 = vsel %vm1340_vm1, %v1376_v8, %v1351_v38  ;;  %v1387_v15 = vperm.slane %v1379_v9, %v4973_v39  ;;  %v1388_v16 = vrot.slane %v1371_v7, 4  ;;  %v1390_v17 = vrot.slane %v1375_v0, 4 }
 0x24a   : > { %v1510_v18 = vrot.slane %v1495_v10, 4  ;;  %v1515_v19 = vsel %vm1340_vm1, 0.0, %v1514_v13  ;;  %v1527_v20 = vsel %vm1340_vm1, %v1514_v13, %v1503_v58  ;;  %v1383_v21 = vperm.slane %v1377_v14, %v4973_v39 }
 0x24b   : > { %v1531_v22 = vperm.slane %v1527_v20, %v4964_v26  ;;  %v1532_v23 = vrot.slane %v1515_v19, 4  ;;  %v1389_v24 = vsel %vm1340_vm1, 0.0, %v1388_v16  ;;  %v1391_v25 = vsel %vm1340_vm1, 0.0, %v1390_v17 }
 0x24c   : > { %v1511_v27 = vsel %vm1340_vm1, 0.0, %v1510_v18  ;;  %v1392_v28 = vrot.slane %v1383_v21, 4  ;;  %v1394_v29 = vrot.slane %v1387_v15, 4  ;;  %v1396_v30 = vsel %vm1340_vm1, %v1390_v17, %v1371_v7 }
 0x24d   : > { %v1521_v31 = vrot.slane %v1511_v27, 4  ;;  %v1533_v32 = vsel %vm1340_vm1, %v1532_v23, %v1513_v12  ;;  %v1400_v33 = vperm.slane %v1396_v30, %v4964_v26  ;;  %v1401_v34 = vrot.slane %v1391_v25, 4 }
 0x24e   : > { %v1393_v35 = vsel %vm1340_vm1, 0.0, %v1392_v28  ;;  %v1395_v36 = vsel %vm1340_vm1, 0.0, %v1394_v29  ;;  %v1407_v37 = vsel %vm1340_vm1, %v1394_v29, %v1383_v21  ;;  %v1509_v38 = vsel %vm1340_vm1, 0.0, %v1508_v11 }
 0x24f   : > { %v1402_v40 = vsel %vm1340_vm1, %v1401_v34, %v1389_v24  ;;  %v1411_v41 = vperm.slane %v1407_v37, %v4964_v26  ;;  %v1412_v42 = vrot.slane %v1395_v36, 4  ;;  %v1420_v43 = vrot.slane %v1400_v33, 4 }
 0x250   : > { %v1406_v44 = vperm.slane %v1402_v40, %v4964_v26  ;;  %v1516_v45 = vsel %vm1340_vm1, %v1510_v18, %v1491_v1  ;;  %v1522_v46 = vsel %vm1340_vm1, %v1521_v31, %v1509_v38  ;;  %v1537_v47 = vperm.slane %v1533_v32, %v4964_v26 }
 0x251   : > { %v1413_v48 = vsel %vm1340_vm1, %v1412_v42, %v1393_v35  ;;  %v1520_v49 = vperm.slane %v1516_v45, %v4964_v26  ;;  %v1526_v50 = vperm.slane %v1522_v46, %v4964_v26  ;;  %v1552_v51 = vrot.slane %v1531_v22, 4  ;;  %v1325_v42 = vpop.f32.mrf.mxu2 }
 0x252   : > { %v1550_v52 = vrot.slane %v1537_v47, 4  ;;  %v1417_v53 = vperm.slane %v1413_v48, %v4964_v26  ;;  %v1432_v54 = vrot.slane %v1411_v41, 4  ;;  %v1421_v58 = vsel %vm1340_vm1, %v1406_v44, %v1420_v43 }
 0x253   : > { %v1540_v55 = vrot.slane %v1520_v49, 4  ;;  %v1553_v56 = vsel %vm1340_vm1, %v1537_v47, %v1552_v51  ;;  %v1538_v57 = vrot.slane %v1526_v50, 4  ;;  %v1418_v62 = vrot.slane %v1406_v44, 4  ;;  %v1223_v44 = vld [vmem:[%s1219_s8] sm:$0xff]  ;;  %s5547_s8 = sld [smem:[#allocation37_spill]] }
 0x254   : > { %v1561_v59 = vperm.slane %v1553_v56, %v4973_v39  ;;  %v1551_v60 = vsel %vm1340_vm1, %v1550_v52, %v1531_v22  ;;  %v1433_v61 = vsel %vm1340_vm1, %v1417_v53, %v1432_v54  ;;  %v1429_v9 = vperm.slane %v1421_v58, %v4973_v39 }
 0x255   : > { %v1541_v63 = vsel %vm1340_vm1, %v1526_v50, %v1540_v55  ;;  %v1539_v0 = vsel %vm1340_vm1, %v1538_v57, %v1520_v49  ;;  %v1557_v1 = vperm.slane %v1551_v60, %v4973_v39  ;;  %v1441_v2 = vperm.slane %v1433_v61, %v4973_v39  ;;  %v3802_v61 = vld [vmem:[%s5545_s6] ss:$0 sm:$0xff] }
 0x256   : > { %v1549_v3 = vperm.slane %v1541_v63, %v4973_v39  ;;  %v1566_v5 = vrot.slane %v1561_v59, 4  ;;  %v1545_v6 = vperm.slane %v1539_v0, %v4973_v39  ;;  %v1419_v7 = vsel %vm1340_vm1, %v1418_v62, %v1400_v33 }
 0x257   : > { %v1562_v8 = vrot.slane %v1557_v1, 4  ;;  %v1430_v10 = vrot.slane %v1417_v53, 4  ;;  %v1425_v14 = vperm.slane %v1419_v7, %v4973_v39  ;;  %v1446_v21 = vrot.slane %v1441_v2, 4 }
 0x258   : > { %v1567_v11 = vsel %vm1340_vm1, %v1566_v5, %v1549_v3  ;;  %v1568_v12 = vrot.slane %v1549_v3, 4  ;;  %v1564_v13 = vrot.slane %v1545_v6, 4  ;;  %v1448_v29 = vrot.slane %v1429_v9, 4 }
 0x259   : > { %v1696_v15 = vpack.c.bf16 %v1567_v11, %v1567_v11  ;;  %v1563_v16 = vsel %vm1340_vm1, %v1562_v8, %v1545_v6  ;;  %v1431_v17 = vsel %vm1340_vm1, %v1430_v10, %v1411_v41  ;;  %v1444_v28 = vrot.slane %v1425_v14, 4  ;;  %v1327_v43 = vpop.f32.mrf.mxu2  ;;  %s1215_s6 = scalar_lea.vmem %s5547_s8, %s4944_s4  ;;  %s5549_s4 = sld [smem:[#allocation52_spill]] }
 0x25a   : > { %v1694_v18 = vpack.c.bf16 %v1563_v16, %v1563_v16  ;;  %v1569_v19 = vsel %vm1340_vm1, %v1561_v59, %v1568_v12  ;;  %v1565_v20 = vsel %vm1340_vm1, %v1557_v1, %v1564_v13  ;;  %v1437_v25 = vperm.slane %v1431_v17, %v4973_v39  ;;  %s5550_s8 = sld [smem:[#allocation53_spill]] }
 0x25b   : > { %v1741_v22 = vsel %vm1698_vm2, %v1696_v15, 0  ;;  %v1697_v23 = vpack.c.bf16 %v1569_v19, %v1569_v19  ;;  %v1695_v24 = vpack.c.bf16 %v1565_v20, %v1565_v20  ;;  %v1447_v33 = vsel %vm1340_vm1, %v1446_v21, %v1429_v9 }
 0x25c   : > { %1750 = vmatpush.bf16.xpose.msrb.mxu1 %v1741_v22  ;;  %v1703_v27 = vsel %vm1698_vm2, %v1694_v18, 0  ;;  %v1442_v32 = vrot.slane %v1437_v25, 4  ;;  %v1449_v35 = vsel %vm1340_vm1, %v1441_v2, %v1448_v29  ;;  %v1445_v36 = vsel %vm1340_vm1, %v1437_v25, %v1444_v28 }
 0x25d   : > { %1712 = vmatpush.bf16.xpose.msra.mxu3 %v1703_v27  ;;  %v1760_v30 = vsel %vm1698_vm2, %v1697_v23, 0  ;;  %v1722_v31 = vsel %vm1698_vm2, %v1695_v24, 0  ;;  %v1692_v37 = vpack.c.bf16 %v1447_v33, %v1447_v33  ;;  %v1693_v40 = vpack.c.bf16 %v1449_v35, %v1449_v35 }
 0x25e   : > { %1769 = vmatpush.bf16.xpose.msrb.mxu2 %v1760_v30  ;;  %1731 = vmatpush.bf16.xpose.msrb.mxu0 %v1722_v31  ;;  %v1443_v34 = vsel %vm1340_vm1, %v1442_v32, %v1425_v14  ;;  %v1691_v41 = vpack.c.bf16 %v1445_v36, %v1445_v36  ;;  %v1326_v62 = vadd.f32 %v3802_v61, %v1325_v42 }
 0x25f   : > { %v1690_v38 = vpack.c.bf16 %v1443_v34, %v1443_v34 }
 0x260   : > { %v1582_v28 = vrot.slane %v1326_v62, 4 }
 0x263   : > { %3461 = vmatmul.msk.bf16.vlgmr.msrb.gmra.mxu1 %vm1698_vm2, %v1692_v37 }
 0x264   : > { %3459 = vmatmul.msk.bf16.vlgmr.msra.gmra.mxu3 %vm1698_vm2, %v1690_v38 }
 0x265   : > { %3462 = vmatmul.msk.bf16.vlgmr.msrb.gmra.mxu2 %vm1698_vm2, %v1693_v40  ;;  %3460 = vmatmul.msk.bf16.vlgmr.msrb.gmra.mxu0 %vm1698_vm2, %v1691_v41 }
 0x2e0   : > { %v1752_v45 = vpop.f32.mrf.mxu1 }
 0x2e1   : > { %v1753_v46 = vadd.f32 %v1752_v45, %v1223_v44 }
 0x2e2   : > { %v1733_v47 = vpop.f32.mrf.mxu0 }
 0x2e3   : > { %v1781_v48 = vsel %vm1698_vm2, %v1753_v46, -inf  ;;  %v1734_v49 = vadd.f32 %v1733_v47, %v1223_v44 }
 0x2e4   : > { %1782 = vmax.xlane.f32.xlu2 %v1781_v48 }
 0x2e5   : > { %v1778_v58 = vsel %vm1698_vm2, %v1734_v49, -inf }
 0x2e7   : > { %v1714_v50 = vpop.f32.mrf.mxu3 }
 0x2e8   : > { %v1715_v51 = vadd.f32 %v1714_v50, %v1223_v44  ;;  %v1754_v52 = vpop.f32.mrf.mxu1  ;;  %v1771_v53 = vpop.f32.mrf.mxu2 }
 0x2e9   : > { %v1772_v54 = vadd.f32 %v1771_v53, %v1223_v44 }
 0x2ea   : > { %v1735_v55 = vpop.f32.mrf.mxu0  ;;  %v1775_v56 = vsel %vm1698_vm2, %v1715_v51, -inf }
 0x2eb   : > { %v1784_v57 = vsel %vm1698_vm2, %v1772_v54, -inf  ;;  %1776 = vmax.xlane.f32.xlu0 %v1775_v56 }
 0x2ec   : > { %1785 = vmax.xlane.f32.xlu1 %v1784_v57  ;;  %1779 = vmax.xlane.f32.xlu2 %v1778_v58 }
 0x2ef   : > { %v1716_v59 = vpop.f32.mrf.mxu3 }
 0x2f0   : > { %v1773_v60 = vpop.f32.mrf.mxu2 }
 0x2ff   : > { %1571 = vrot.lane.b32.xlu0 %v1326_v62, %s4449_s26 }
 0x304   : > { %1577 = vrot.lane.b32.xlu2 %v1326_v62, %s4448_s3 }
 0x305   : > { %1574 = vrot.lane.b32.xlu1 %v1326_v62, %s4450_s5 }
 0x357   : > { %v1783_v63 = vpop.xlane.xlu2 %1782 }
 0x358   : > { %v1789_v0 = vsub.f32 %v1753_v46, %v1783_v63 }
 0x35a   : > { %v1795_v1 = vmul.f32 1.442695, %v1789_v0 }
 0x35c   : > { %3816 = vpow2.f32 %v1795_v1 }
 0x35e   : > { %v1777_v2 = vpop.xlane.xlu0 %1776 }
 0x35f   : > { %v1786_v3 = vpop.xlane.xlu1 %1785  ;;  %v1780_v5 = vpop.xlane.xlu2 %1779  ;;  %v1787_v6 = vsub.f32 %v1715_v51, %v1777_v2 }
 0x360   : > { %v1790_v7 = vsub.f32 %v1772_v54, %v1786_v3  ;;  %v1788_v8 = vsub.f32 %v1734_v49, %v1780_v5 }
 0x361   : > { %v1791_v9 = vmul.f32 1.442695, %v1787_v6 }
 0x362   : > { %v5065_v10 = vpop.eup %3816  ;;  %v1797_v11 = vmul.f32 1.442695, %v1790_v7  ;;  %v1793_v13 = vmul.f32 1.442695, %v1788_v8 }
 0x363   : > { %3818 = vpow2.f32 %v1791_v9  ;;  %v1805_v12 = vsel %vm1698_vm2, %v5065_v10, 0.0 }
 0x364   : > { %3820 = vpow2.f32 %v1797_v11  ;;  %1806 = vadd.xlane.f32.xlu2 %v1805_v12 }
 0x365   : > { %3822 = vpow2.f32 %v1793_v13 }
 0x367   : > { %v1578_v19 = vpop.permute.xlu2 %1577 }
 0x368   : > { %v1592_v21 = vrot.slane %v1578_v19, 4 }
 0x369   : > { %v5069_v14 = vpop.eup %3818 }
 0x36a   : > { %v5071_v15 = vpop.eup %3820  ;;  %v1799_v16 = vsel %vm1698_vm2, %v5069_v14, 0.0 }
 0x36b   : > { %v1808_v17 = vsel %vm1698_vm2, %v5071_v15, 0.0  ;;  %1800 = vadd.xlane.f32.xlu0 %v1799_v16  ;;  %v5077_v18 = vpop.eup %3822 }
 0x36c   : > { %1809 = vadd.xlane.f32.xlu1 %v1808_v17  ;;  %v1802_v23 = vsel %vm1698_vm2, %v5077_v18, 0.0 }
 0x371   : > { %v1572_v20 = vpop.permute.xlu0 %1571 }
 0x372   : > { %v1594_v22 = vrot.slane %v1572_v20, 4  ;;  %v1593_v24 = vsel %vm1340_vm1, %v1592_v21, %v1572_v20 }
 0x373   : > { %1803 = vadd.xlane.f32.xlu0 %v1802_v23  ;;  %v1599_v29 = vperm.slane %v1593_v24, %v4964_v26 }
 0x374   : > { %v1595_v25 = vsel %vm1340_vm1, %v1578_v19, %v1594_v22 }
 0x375   : > { %v1603_v27 = vperm.slane %v1595_v25, %v4964_v26  ;;  %v1604_v36 = vrot.slane %v1599_v29, 4 }
 0x377   : > { %v1616_v30 = vrot.slane %v1603_v27, 4  ;;  %v1575_v31 = vpop.permute.xlu1 %1574 }
 0x378   : > { %v1580_v32 = vrot.slane %v1575_v31, 4  ;;  %v1583_v33 = vsel %vm1340_vm1, %v1575_v31, %v1582_v28 }
 0x379   : > { %v1591_v34 = vperm.slane %v1583_v33, %v4964_v26 }
 0x37a   : > { %v1581_v35 = vsel %vm1340_vm1, %v1580_v32, %v1326_v62 }
 0x37b   : > { %v1587_v37 = vperm.slane %v1581_v35, %v4964_v26  ;;  %v1617_v38 = vsel %vm1340_vm1, %v1616_v30, %v1591_v34  ;;  %v1618_v40 = vrot.slane %v1591_v34, 4 }
 0x37c   : > { %v1623_v41 = vperm.slane %v1617_v38, %v4973_v39 }
 0x37d   : > { %v1605_v42 = vsel %vm1340_vm1, %v1604_v36, %v1587_v37  ;;  %v1606_v43 = vrot.slane %v1587_v37, 4  ;;  %v1619_v44 = vsel %vm1340_vm1, %v1603_v27, %v1618_v40 }
 0x37e   : > { %v1611_v45 = vperm.slane %v1605_v42, %v4973_v39  ;;  %v1627_v46 = vperm.slane %v1619_v44, %v4973_v39  ;;  %v1632_v49 = vrot.slane %v1623_v41, 4 }
 0x37f   : > { %v1607_v47 = vsel %vm1340_vm1, %v1599_v29, %v1606_v43 }
 0x380   : > { %v1615_v48 = vperm.slane %v1607_v47, %v4973_v39  ;;  %v1634_v50 = vrot.slane %v1627_v46, 4  ;;  %v1628_v51 = vrot.slane %v1611_v45, 4  ;;  %v1633_v58 = vsel %vm1340_vm1, 0.0, %v1632_v49 }
 0x382   : > { %v1630_v52 = vrot.slane %v1615_v48, 4  ;;  %v1635_v53 = vsel %vm1340_vm1, 0.0, %v1634_v50  ;;  %v1647_v54 = vsel %vm1340_vm1, %v1634_v50, %v1623_v41  ;;  %v1629_v0 = vsel %vm1340_vm1, 0.0, %v1628_v51 }
 0x383   : > { %v1651_v55 = vperm.slane %v1647_v54, %v4964_v26  ;;  %v1652_v56 = vrot.slane %v1635_v53, 4 }
 0x384   : > { %v1631_v57 = vsel %vm1340_vm1, 0.0, %v1630_v52  ;;  %v1636_v59 = vsel %vm1340_vm1, %v1630_v52, %v1611_v45 }
 0x385   : > { %v1641_v60 = vrot.slane %v1631_v57, 4  ;;  %v1653_v61 = vsel %vm1340_vm1, %v1652_v56, %v1633_v58  ;;  %v1672_v62 = vrot.slane %v1651_v55, 4  ;;  %v1640_v63 = vperm.slane %v1636_v59, %v4964_v26 }
 0x386   : > { %v1657_v1 = vperm.slane %v1653_v61, %v4964_v26 }
 0x387   : > { %v1642_v2 = vsel %vm1340_vm1, %v1641_v60, %v1629_v0  ;;  %v1660_v3 = vrot.slane %v1640_v63, 4 }
 0x388   : > { %v1646_v5 = vperm.slane %v1642_v2, %v4964_v26  ;;  %v1673_v6 = vsel %vm1340_vm1, %v1657_v1, %v1672_v62  ;;  %v1670_v7 = vrot.slane %v1657_v1, 4 }
 0x389   : > { %v1681_v8 = vperm.slane %v1673_v6, %v4973_v39 }
 0x38a   : > { %v1661_v9 = vsel %vm1340_vm1, %v1646_v5, %v1660_v3  ;;  %v1658_v11 = vrot.slane %v1646_v5, 4  ;;  %v1671_v12 = vsel %vm1340_vm1, %v1670_v7, %v1651_v55 }
 0x38b   : > { %v1669_v13 = vperm.slane %v1661_v9, %v4973_v39  ;;  %v1686_v16 = vrot.slane %v1681_v8, 4  ;;  %v1677_v17 = vperm.slane %v1671_v12, %v4973_v39 }
 0x38c   : > { %v1659_v19 = vsel %vm1340_vm1, %v1658_v11, %v1640_v63 }
 0x38d   : > { %v1687_v20 = vsel %vm1340_vm1, %v1686_v16, %v1669_v13  ;;  %v1665_v21 = vperm.slane %v1659_v19, %v4973_v39  ;;  %v1682_v22 = vrot.slane %v1677_v17, 4  ;;  %v1688_v23 = vrot.slane %v1669_v13, 4 }
 0x38e   : > { %v1825_v24 = vpack.c.bf16 %v1687_v20, %v1687_v20 }
 0x38f   : > { %v1683_v25 = vsel %vm1340_vm1, %v1682_v22, %v1665_v21  ;;  %v1684_v27 = vrot.slane %v1665_v21, 4  ;;  %v1689_v28 = vsel %vm1340_vm1, %v1681_v8, %v1688_v23 }
 0x390   : > { %v1870_v29 = vsel %vm1830_vm3, %v1825_v24, 0  ;;  %v1823_v30 = vpack.c.bf16 %v1683_v25, %v1683_v25  ;;  %v1826_v31 = vpack.c.bf16 %v1689_v28, %v1689_v28 }
 0x391   : > { %1879 = vmatpush.bf16.msra.mxu1 %v1870_v29  ;;  %v1685_v32 = vsel %vm1340_vm1, %v1677_v17, %v1684_v27 }
 0x392   : > { %v1832_v33 = vsel %vm1830_vm3, %v1823_v30, 0  ;;  %v1889_v34 = vsel %vm1830_vm3, %v1826_v31, 0  ;;  %v1824_v35 = vpack.c.bf16 %v1685_v32, %v1685_v32 }
 0x393   : > { %1841 = vmatpush.bf16.msrb.mxu3 %v1832_v33  ;;  %1898 = vmatpush.bf16.msra.mxu2 %v1889_v34 }
 0x394   : > { %v1851_v36 = vsel %vm1830_vm3, %v1824_v35, 0 }
 0x395   : > { %1860 = vmatpush.bf16.msra.mxu0 %v1851_v36 }
 0x3d7   : > { %v1807_v37 = vpop.xlane.xlu2 %1806 }
 0x3d8   : > { %3824 = vrcp.f32 %v1807_v37 }
 0x3de   : > { %v3825_v38 = vpop.eup %3824  ;;  %v1801_v40 = vpop.xlane.xlu0 %1800 }
 0x3df   : > { %v1817_v41 = vmul.f32 %v3825_v38, %v5065_v10  ;;  %v1810_v42 = vpop.xlane.xlu1 %1809  ;;  %3826 = vrcp.f32 %v1801_v40 }
 0x3e0   : > { %3828 = vrcp.f32 %v1810_v42 }
 0x3e1   : > { %v1821_v43 = vpack.c.bf16 %v1817_v41, %v1817_v41 }
 0x3e3   : > { %3465 = vmatmul.msk.bf16.vlgmr.msra.gmra.mxu1 %vm1698_vm2, %v1821_v43 }
 0x3e5   : > { %v3827_v44 = vpop.eup %3826 }
 0x3e6   : > { %v3829_v45 = vpop.eup %3828  ;;  %v1815_v46 = vmul.f32 %v3827_v44, %v5069_v14  ;;  %v1804_v47 = vpop.xlane.xlu0 %1803 }
 0x3e7   : > { %v1818_v48 = vmul.f32 %v3829_v45, %v5071_v15  ;;  %3830 = vrcp.f32 %v1804_v47 }
 0x3e8   : > { %v1819_v49 = vpack.c.bf16 %v1815_v46, %v1815_v46 }
 0x3e9   : > { %v1822_v50 = vpack.c.bf16 %v1818_v48, %v1818_v48 }
 0x3ea   : > { %3463 = vmatmul.msk.bf16.vlgmr.msrb.gmra.mxu3 %vm1698_vm2, %v1819_v49 }
 0x3eb   : > { %3466 = vmatmul.msk.bf16.vlgmr.msra.gmra.mxu2 %vm1698_vm2, %v1822_v50 }
 0x3ed   : > { %v3831_v10 = vpop.eup %3830 }
 0x3ee   : > { %v1816_v51 = vmul.f32 %v3831_v10, %v5077_v18 }
 0x3f0   : > { %v1820_v52 = vpack.c.bf16 %v1816_v51, %v1816_v51 }
 0x3f2   : > { %3464 = vmatmul.msk.bf16.vlgmr.msra.gmra.mxu0 %vm1698_vm2, %v1820_v52 }
 0x460   : > { %v1881_v53 = vpop.f32.mrf.mxu1 }
 0x461   : > { %v1904_v55 = vrot.slane %v1881_v53, 4 }
 0x468   : > { %v1883_v54 = vpop.f32.mrf.mxu1 }
 0x46d   : > { %v1843_v14 = vpop.f32.mrf.mxu3 }
 0x46e   : > { %v1905_v56 = vsel %vm1340_vm1, %v1904_v55, %v1843_v14  ;;  %v1906_v15 = vrot.slane %v1843_v14, 4  ;;  %v1900_v57 = vpop.f32.mrf.mxu2 }
 0x46f   : > { %v1911_v58 = vperm.slane %v1905_v56, %v4964_v26  ;;  %v1916_v59 = vrot.slane %v1900_v57, 4  ;;  %v1862_v60 = vpop.f32.mrf.mxu0 }
 0x470   : > { %v1907_v61 = vsel %vm1340_vm1, %v1881_v53, %v1906_v15  ;;  %v1918_v62 = vrot.slane %v1862_v60, 4 }
 0x471   : > { %v1915_v18 = vperm.slane %v1907_v61, %v4964_v26  ;;  %v1930_v63 = vrot.slane %v1911_v58, 4  ;;  %v1917_v0 = vsel %vm1340_vm1, %v1916_v59, %v1862_v60  ;;  %v3557_v60 = vld [vmem:[#allocation10 + $0x8] sm:$0xff]  ;;  %v3556_v61 = vld [vmem:[#allocation10] sm:$0xff] }
 0x472   : > { %v1919_v1 = vsel %vm1340_vm1, %v1900_v57, %v1918_v62  ;;  %v1923_v2 = vperm.slane %v1917_v0, %v4964_v26  ;;  %2061 = vmatpush.bf16.msra.mxu3 %v3557_v60 }
 0x473   : > { %v1942_v3 = vrot.slane %v1915_v18, 4  ;;  %v1927_v5 = vperm.slane %v1919_v1, %v4964_v26 }
 0x474   : > { %v1928_v6 = vrot.slane %v1923_v2, 4  ;;  %v1931_v7 = vsel %vm1340_vm1, %v1923_v2, %v1930_v63 }
 0x475   : > { %v1939_v8 = vperm.slane %v1931_v7, %v4973_v39  ;;  %v1940_v9 = vrot.slane %v1927_v5, 4  ;;  %v1943_v11 = vsel %vm1340_vm1, %v1927_v5, %v1942_v3  ;;  %v1845_v12 = vpop.f32.mrf.mxu3  ;;  %v3803_v5 = vld [vmem:[%s5546_s7] ss:$0 sm:$0xff]  ;;  %s5548_s7 = sld [smem:[#allocation48_spill]] }
 0x476   : > { %v1929_v13 = vsel %vm1340_vm1, %v1928_v6, %v1911_v58  ;;  %v1951_v16 = vperm.slane %v1943_v11, %v4973_v39  ;;  %v1902_v17 = vpop.f32.mrf.mxu2  ;;  %2062 = vmatpush.bf16.msra.mxu3 %v3556_v61  ;;  %v4456_v12 = vmov 32.0  }
 0x477   : > { %v1935_v19 = vperm.slane %v1929_v13, %v4973_v39  ;;  %v1941_v20 = vsel %vm1340_vm1, %v1940_v9, %v1915_v18  ;;  %v1954_v21 = vrot.slane %v1939_v8, 4  ;;  %v1864_v22 = vpop.f32.mrf.mxu0  ;;  %3832 = vrcp.f32 %v4456_v12  ;;  %v3561_v13 = vld [vmem:[#allocation13 + $0x8] sm:$0xff]  ;;  %v3560_v17 = vld [vmem:[#allocation13] sm:$0xff] }
 0x478   : > { %v1947_v23 = vperm.slane %v1941_v20, %v4973_v39  ;;  %v1958_v24 = vrot.slane %v1951_v16, 4  ;;  %v1222_v16 = vld [vmem:[%s1215_s6] sm:$0xff]  ;;  %2175 = vmatpush.bf16.msrb.mxu1 %v3561_v13  ;;  %s5551_s6 = sld [smem:[#allocation46_spill]] }
 0x479   : > { %v1952_v25 = vrot.slane %v1935_v19, 4  ;;  %v1955_v27 = vsel %vm1340_vm1, 0.0, %v1954_v21  ;;  %v1960_v28 = vsel %vm1340_vm1, %v1954_v21, %v1935_v19  ;;  %v5185_v20 = vpack.c.bf16 %v1222_v16, %v1222_v16 }
 0x47a   : > { %v1956_v29 = vrot.slane %v1947_v23, 4  ;;  %v1959_v30 = vsel %vm1340_vm1, 0.0, %v1958_v24  ;;  %v1964_v31 = vperm.slane %v1960_v28, %v4964_v26  ;;  %v1965_v32 = vrot.slane %v1955_v27, 4 }
 0x47b   : > { %v1953_v33 = vsel %vm1340_vm1, 0.0, %v1952_v25  ;;  %v1976_v34 = vrot.slane %v1959_v30, 4  ;;  %v1971_v35 = vsel %vm1340_vm1, %v1958_v24, %v1947_v23 }
 0x47c   : > { %v1957_v36 = vsel %vm1340_vm1, 0.0, %v1956_v29  ;;  %v1966_v37 = vsel %vm1340_vm1, %v1965_v32, %v1953_v33  ;;  %v1975_v38 = vperm.slane %v1971_v35, %v4964_v26  ;;  %v1984_v40 = vrot.slane %v1964_v31, 4  ;;  %2176 = vmatpush.bf16.msrb.mxu1 %v3560_v17  ;;  %v3558_v32 = vld [vmem:[#allocation11] sm:$0xff]  ;;  %v3806_v33 = vld [vmem:[%s5548_s7] ss:$0 sm:$0xff]  ;;  %s5552_s7 = sld [smem:[#allocation49_spill]] }
 0x47d   : > { %v1970_v41 = vperm.slane %v1966_v37, %v4964_v26  ;;  %v1977_v42 = vsel %vm1340_vm1, %v1976_v34, %v1957_v36  ;;  %v3833_v19 = vpop.eup %3832 }
 0x47e   : > { %v1981_v43 = vperm.slane %v1977_v42, %v4964_v26  ;;  %v1996_v44 = vrot.slane %v1975_v38, 4  ;;  %v2075_v21 = vmul.f32 32.0, %v3833_v19  ;;  %vm2079_vm6 = vweird.f32 %v3833_v19 }
 0x47f   : > { %v1985_v45 = vsel %vm1340_vm1, %v1970_v41, %v1984_v40  ;;  %v1982_v46 = vrot.slane %v1970_v41, 4  ;;  %3493 = vmatmul.msk.bf16.vlgmr.msrb.gmra.mxu1 %vm1246_vm0, %v5185_v20 }
 0x480   : > { %v1993_v47 = vperm.slane %v1985_v45, %v4973_v39  ;;  %v1997_v48 = vsel %vm1340_vm1, %v1981_v43, %v1996_v44  ;;  %v1994_v49 = vrot.slane %v1981_v43, 4 }
 0x481   : > { %v2005_v50 = vperm.slane %v1997_v48, %v4973_v39  ;;  %v1983_v10 = vsel %vm1340_vm1, %v1982_v46, %v1964_v31  ;;  %v3559_v31 = vld [vmem:[#allocation11 + $0x8] sm:$0xff] }
 0x482   : > { %v2012_v51 = vrot.slane %v1993_v47, 4  ;;  %v1989_v52 = vperm.slane %v1983_v10, %v4973_v39  ;;  %v1995_v53 = vsel %vm1340_vm1, %v1994_v49, %v1975_v38  ;;  %2138 = vmatpush.bf16.msrb.mxu0 %v3559_v31  ;;  %v3805_v49 = vld [vmem:[%s5550_s8] ss:$0 sm:$0xff] }
 0x483   : > { %v2010_v54 = vrot.slane %v2005_v50, 4  ;;  %v2001_v55 = vperm.slane %v1995_v53, %v4973_v39 }
 0x484   : > { %v2013_v14 = vsel %vm1340_vm1, %v2005_v50, %v2012_v51  ;;  %v2008_v56 = vrot.slane %v1989_v52, 4 }
 0x485   : > { %2023 = vrot.lane.b32.xlu2 %v2013_v14, %s4453_s12  ;;  %v2011_v15 = vsel %vm1340_vm1, %v2010_v54, %v1993_v47  ;;  %v2006_v57 = vrot.slane %v2001_v55, 4  ;;  %v3804_v47 = vld [vmem:[%s5549_s4] ss:$0 sm:$0xff] }
 0x486   : > { %2019 = vrot.lane.b32.xlu0 %v2011_v15, %s4454_s17  ;;  %v2009_v58 = vsel %vm1340_vm1, %v2001_v55, %v2008_v56  ;;  %2139 = vmatpush.bf16.msrb.mxu0 %v3558_v32 }
 0x487   : > { %2015 = vrot.lane.b32.xlu1 %v2009_v58, %s4455_s0  ;;  %v2007_v59 = vsel %vm1340_vm1, %v2006_v57, %v1989_v52 }
 0x4df   : > { %v2024_v0 = vpop.permute.xlu2 %2023 }
 0x4f8   : > { %v2020_v62 = vpop.permute.xlu0 %2019 }
 0x4f9   : > { %v2016_v18 = vpop.permute.xlu1 %2015 }
 0x4fa   : > { %v2026_v63 = vsel %vm1698_vm2, %v2007_v59, %v2016_v18 }
 0x4fb   : > { %v2028_v1 = vsel %vm2027_vm4, %v2026_v63, %v2020_v62 }
 0x4fc   : > { %v2030_v2 = vsel %vm2029_vm5, %v2028_v1, %v2024_v0  ;;  %v2178_v34 = vpop.f32.mrf.mxu1 }
 0x4fd   : > { %v2031_v3 = vpack.c.bf16 %v2030_v2, %v2030_v2  ;;  %v2179_v37 = vadd.f32 %v3806_v33, %v2178_v34 }
 0x4ff   : > { %3475 = vmatmul.msk.bf16.vlgmr.msra.gmra.mxu3 %vm1246_vm0, %v2031_v3  ;;  %2336 = vrot.lane.b32.xlu2 %v2179_v37, %s4449_s26  ;;  %v2347_v54 = vrot.slane %v2179_v37, 4 }
 0x504   : > { %v2180_v40 = vpop.f32.mrf.mxu1 }
 0x507   : > { %2339 = vrot.lane.b32.xlu2 %v2179_v37, %s4450_s5 }
 0x50f   : > { %2342 = vrot.lane.b32.xlu2 %v2179_v37, %s4448_s3 }
 0x559   : > { %v2337_v53 = vpop.permute.xlu2 %2336 }
 0x55a   : > { %v2359_v58 = vrot.slane %v2337_v53, 4 }
 0x561   : > { %v2340_v55 = vpop.permute.xlu2 %2339 }
 0x562   : > { %v2345_v14 = vrot.slane %v2340_v55, 4  ;;  %v2348_v56 = vsel %vm1340_vm1, %v2340_v55, %v2347_v54 }
 0x563   : > { %v2356_v57 = vperm.slane %v2348_v56, %v4964_v26 }
 0x564   : > { %v2346_v15 = vsel %vm1340_vm1, %v2345_v14, %v2179_v37 }
 0x565   : > { %v2352_v59 = vperm.slane %v2346_v15, %v4964_v26  ;;  %v2383_v60 = vrot.slane %v2356_v57, 4 }
 0x567   : > { %v2371_v63 = vrot.slane %v2352_v59, 4 }
 0x569   : > { %v2343_v61 = vpop.permute.xlu2 %2342 }
 0x56a   : > { %v2357_v62 = vrot.slane %v2343_v61, 4  ;;  %v2360_v18 = vsel %vm1340_vm1, %v2343_v61, %v2359_v58  ;;  %v3562_v61 = vld [vmem:[#allocation14] sm:$0xff] }
 0x56b   : > { %v2368_v0 = vperm.slane %v2360_v18, %v4964_v26 }
 0x56c   : > { %v2358_v1 = vsel %vm1340_vm1, %v2357_v62, %v2337_v53 }
 0x56d   : > { %v2364_v2 = vperm.slane %v2358_v1, %v4964_v26  ;;  %v2381_v3 = vrot.slane %v2368_v0, 4 }
 0x582   : > { %v2064_v6 = vpop.f32.mrf.mxu3 }
 0x583   : > { %v2065_v7 = vadd.f32 %v3803_v5, %v2064_v6  ;;  %v2384_v5 = vsel %vm1340_vm1, %v2368_v0, %v2383_v60 }
 0x584   : > { %v2392_v6 = vperm.slane %v2384_v5, %v4973_v39 }
 0x585   : > { %v2068_v8 = vadd.f32 %v2065_v7, %v4948_v4  ;;  %v2076_v4 = vsub.f32 1.0, %v2075_v21  ;;  %v2369_v7 = vrot.slane %v2364_v2, 4 }
 0x586   : > { %v2399_v13 = vrot.slane %v2392_v6, 4 }
 0x587   : > { %v2071_v9 = vsel %vm1246_vm0, %v2068_v8, 0.0  ;;  %v2077_v22 = vmul.f32 %v3833_v19, %v2076_v4  ;;  %v2370_v16 = vsel %vm1340_vm1, %v2369_v7, %v2352_v59 }
 0x588   : > { %2072 = vadd.xlane.f32.xlu0 %v2071_v9  ;;  %v2382_v9 = vsel %vm1340_vm1, %v2381_v3, %v2356_v57  ;;  %v2376_v17 = vperm.slane %v2370_v16, %v4973_v39  ;;  %v2400_v4 = vsel %vm1340_vm1, 0.0, %v2399_v13 }
 0x589   : > { %v2078_v23 = vadd.f32 %v3833_v19, %v2077_v22  ;;  %v2388_v12 = vperm.slane %v2382_v9, %v4973_v39  ;;  %v2417_v22 = vrot.slane %v2400_v4, 4 }
 0x58a   : > { %v2066_v11 = vpop.f32.mrf.mxu3 }
 0x58b   : > { %v5189_v24 = vsel %vm2079_vm6, %v3833_v19, %v2078_v23  ;;  %v2397_v21 = vrot.slane %v2388_v12, 4  ;;  %v2393_v23 = vrot.slane %v2376_v17, 4 }
 0x58d   : > { %v2394_v31 = vsel %vm1340_vm1, 0.0, %v2393_v23 }
 0x5fb   : > { %v2073_v25 = vpop.xlane.xlu0 %2072 }
 0x5fc   : > { %v2081_v27 = vmul.f32 %v5189_v24, %v2073_v25 }
 0x5fe   : > { %v2082_v28 = vsub.f32 %v2068_v8, %v2081_v27  ;;  %v2372_v8 = vsel %vm1340_vm1, %v2364_v2, %v2371_v63  ;;  %v2398_v27 = vsel %vm1340_vm1, 0.0, %v2397_v21  ;;  %v3807_v2 = vld [vmem:[%s5551_s6] ss:$0 sm:$0xff] }
 0x5ff   : > { %v2380_v11 = vperm.slane %v2372_v8, %v4973_v39  ;;  %v3808_v21 = vld [vmem:[%s5552_s7] ss:$0 sm:$0xff] }
 0x600   : > { %v2083_v29 = vmul.f32 %v2082_v28, %v2082_v28 }
 0x601   : > { %v2395_v19 = vrot.slane %v2380_v11, 4 }
 0x602   : > { %v2084_v30 = vsel %vm1246_vm0, %v2083_v29, 0.0  ;;  %v2418_v29 = vsel %vm1340_vm1, %v2417_v22, %v2398_v27 }
 0x603   : > { %2085 = vadd.xlane.f32.xlu1 %v2084_v30  ;;  %v2396_v25 = vsel %vm1340_vm1, 0.0, %v2395_v19  ;;  %v2422_v33 = vperm.slane %v2418_v29, %v4964_v26 }
 0x604   : > { %v2406_v30 = vrot.slane %v2396_v25, 4 }
 0x605   : > { %v2435_v37 = vrot.slane %v2422_v33, 4 }
 0x606   : > { %v2407_v34 = vsel %vm1340_vm1, %v2406_v30, %v2394_v31 }
 0x676   : > { %v2086_v35 = vpop.xlane.xlu1 %2085 }
 0x677   : > { %v2087_v36 = vmul.f32 %v2086_v35, %v5189_v24 }
 0x679   : > { %v2088_v38 = vadd.f32 1e-06, %v2087_v36  ;;  %v2411_v36 = vperm.slane %v2407_v34, %v4964_v26 }
 0x67b   : > { %3834 = vrsqrt.f32 %v2088_v38  ;;  %vm2095_vm8 = vweird.f32 %v2088_v38 }
 0x681   : > { %v3835_v41 = vpop.eup %3834 }
 0x682   : > { %v2090_v42 = vmul.f32 %v3835_v41, %v2088_v38  ;;  %vm2096_vm7 = vweird.f32 %v3835_v41  ;;  %v2401_v38 = vsel %vm1340_vm1, %v2395_v19, %v2376_v17 }
 0x683   : > { %vm2097_vm9 = vmor %vm2095_vm8, %vm2096_vm7  ;;  %v2405_v40 = vperm.slane %v2401_v38, %v4964_v26 }
 0x684   : > { %v2091_v43 = vmul.f32 %v3835_v41, %v2090_v42 }
 0x686   : > { %v2092_v44 = vmul.f32 0.5, %v2091_v43 }
 0x688   : > { %v2093_v45 = vsub.f32 1.5, %v2092_v44 }
 0x68a   : > { %v2094_v46 = vmul.f32 %v3835_v41, %v2093_v45  ;;  %v2425_v45 = vrot.slane %v2405_v40, 4 }
 0x68c   : > { %v2098_v48 = vsel %vm2097_vm9, %v3835_v41, %v2094_v46  ;;  %v2423_v41 = vrot.slane %v2411_v36, 4 }
 0x68d   : > { %v2099_v50 = vmul.f32 %v2098_v48, %v2082_v28  ;;  %v2412_v28 = vsel %vm1340_vm1, %v2399_v13, %v2388_v12 }
 0x68e   : > { %v2416_v32 = vperm.slane %v2412_v28, %v4964_v26  ;;  %v2424_v44 = vsel %vm1340_vm1, %v2423_v41, %v2405_v40 }
 0x68f   : > { %v2103_v10 = vmul.f32 %v3804_v47, %v2099_v50  ;;  %v2430_v47 = vperm.slane %v2424_v44, %v4973_v39  ;;  %v2426_v50 = vsel %vm1340_vm1, %v2411_v36, %v2425_v45 }
 0x690   : > { %v2437_v35 = vrot.slane %v2416_v32, 4  ;;  %v2436_v42 = vsel %vm1340_vm1, %v2435_v37, %v2416_v32  ;;  %v2434_v54 = vperm.slane %v2426_v50, %v4973_v39 }
 0x691   : > { %v5200_v51 = vadd.f32 %v3805_v49, %v2103_v10  ;;  %v2442_v43 = vperm.slane %v2436_v42, %v4973_v39  ;;  %v3563_v10 = vld [vmem:[#allocation14 + $0x8] sm:$0xff]  ;;  %v2449_v53 = vrot.slane %v2430_v47, 4 }
 0x692   : > { %v2438_v46 = vsel %vm1340_vm1, %v2422_v33, %v2437_v35  ;;  %2208 = vmatpush.bf16.msrb.mxu2 %v3563_v10  ;;  %v2453_v57 = vrot.slane %v2434_v54, 4 }
 0x693   : > { %v2108_v52 = vpack.c.bf16 %v5200_v51, %v5200_v51  ;;  %v2447_v48 = vrot.slane %v2442_v43, 4  ;;  %v2446_v49 = vperm.slane %v2438_v46, %v4973_v39  ;;  %v2450_v56 = vsel %vm1340_vm1, %v2442_v43, %v2449_v53 }
 0x694   : > { %v2580_v59 = vpack.c.bf16 %v2450_v56, %v2450_v56 }
 0x695   : > { %3484 = vmatmul.msk.bf16.vlgmr.msrb.gmra.mxu0 %vm1246_vm0, %v2108_v52  ;;  %v2448_v52 = vsel %vm1340_vm1, %v2447_v48, %v2430_v47  ;;  %v2451_v55 = vrot.slane %v2446_v49, 4  ;;  %v2454_v62 = vsel %vm1340_vm1, %v2446_v49, %v2453_v57 }
 0x696   : > { %v2579_v14 = vpack.c.bf16 %v2448_v52, %v2448_v52  ;;  %v2606_v18 = vsel %vm1698_vm2, %v2580_v59, 0  ;;  %v2582_v0 = vpack.c.bf16 %v2454_v62, %v2454_v62  ;;  %2209 = vmatpush.bf16.msrb.mxu2 %v3562_v61 }
 0x697   : > { %v2452_v15 = vsel %vm1340_vm1, %v2451_v55, %v2434_v54  ;;  %2615 = vmatpush.bf16.xpose.msra.mxu0 %v2606_v18 }
 0x698   : > { %v2587_v58 = vsel %vm1698_vm2, %v2579_v14, 0  ;;  %v2581_v60 = vpack.c.bf16 %v2452_v15, %v2452_v15  ;;  %v2644_v1 = vsel %vm1698_vm2, %v2582_v0, 0 }
 0x699   : > { %2596 = vmatpush.bf16.xpose.msrb.mxu3 %v2587_v58  ;;  %3502 = vmatmul.msk.bf16.vlgmr.msrb.gmra.mxu2 %vm1246_vm0, %v5185_v20 }
 0x69a   : > { %v2625_v63 = vsel %vm1698_vm2, %v2581_v60, 0  ;;  %2653 = vmatpush.bf16.xpose.msra.mxu2 %v2644_v1 }
 0x69b   : > { %2634 = vmatpush.bf16.xpose.msra.mxu1 %v2625_v63 }
 0x712   : > { %v2141_v3 = vpop.f32.mrf.mxu0 }
 0x713   : > { %v2142_v5 = vadd.f32 %v3807_v2, %v2141_v3 }
 0x715   : > { %2222 = vrot.lane.b32.xlu0 %v2142_v5, %s4448_s3  ;;  %2216 = vrot.lane.b32.xlu2 %v2142_v5, %s4449_s26  ;;  %v2227_v11 = vrot.slane %v2142_v5, 4 }
 0x71a   : > { %v2143_v6 = vpop.f32.mrf.mxu0 }
 0x71c   : > { %v2211_v29 = vpop.f32.mrf.mxu2 }
 0x71d   : > { %2219 = vrot.lane.b32.xlu2 %v2142_v5, %s4450_s5  ;;  %v5265_v33 = vadd.f32 %v3808_v21, %v2211_v29 }
 0x71f   : > { %2456 = vrot.lane.b32.xlu0 %v5265_v33, %s4449_s26  ;;  %s5555_s26 = sld [smem:[#allocation57_spill]] }
 0x724   : > { %v2213_v53 = vpop.f32.mrf.mxu2 }
 0x727   : > { %2462 = vrot.lane.b32.xlu0 %v5265_v33, %s4448_s3  ;;  %s5554_s3 = sld [smem:[#allocation56_spill]] }
 0x76f   : > { %v2217_v7 = vpop.permute.xlu2 %2216 }
 0x770   : > { %v2239_v16 = vrot.slane %v2217_v7, 4 }
 0x777   : > { %v2220_v8 = vpop.permute.xlu2 %2219 }
 0x778   : > { %v2225_v9 = vrot.slane %v2220_v8, 4  ;;  %v2228_v12 = vsel %vm1340_vm1, %v2220_v8, %v2227_v11 }
 0x779   : > { %v2236_v20 = vperm.slane %v2228_v12, %v4964_v26 }
 0x77a   : > { %v2226_v13 = vsel %vm1340_vm1, %v2225_v9, %v2142_v5 }
 0x77b   : > { %v2232_v17 = vperm.slane %v2226_v13, %v4964_v26  ;;  %v2263_v23 = vrot.slane %v2236_v20, 4 }
 0x77d   : > { %v2251_v27 = vrot.slane %v2232_v17, 4 }
 0x787   : > { %v2223_v19 = vpop.permute.xlu0 %2222 }
 0x788   : > { %v2237_v4 = vrot.slane %v2223_v19, 4  ;;  %v2240_v22 = vsel %vm1340_vm1, %v2223_v19, %v2239_v16 }
 0x789   : > { %v2248_v25 = vperm.slane %v2240_v22, %v4964_v26 }
 0x78a   : > { %v2238_v28 = vsel %vm1340_vm1, %v2237_v4, %v2217_v7 }
 0x78b   : > { %v2244_v30 = vperm.slane %v2238_v28, %v4964_v26  ;;  %v2261_v31 = vrot.slane %v2248_v25, 4  ;;  %v2264_v32 = vsel %vm1340_vm1, %v2248_v25, %v2263_v23 }
 0x78c   : > { %v2272_v34 = vperm.slane %v2264_v32, %v4973_v39 }
 0x78d   : > { %v2249_v35 = vrot.slane %v2244_v30, 4  ;;  %v2252_v36 = vsel %vm1340_vm1, %v2244_v30, %v2251_v27  ;;  %v2262_v37 = vsel %vm1340_vm1, %v2261_v31, %v2236_v20  ;;  %v1224_v27 = vld [vmem:[%s4908_s9] sm:$0xff]  ;;  %s5553_s9 = sld [smem:[#allocation51_spill]] }
 0x78e   : > { %v2260_v38 = vperm.slane %v2252_v36, %v4973_v39  ;;  %v2268_v40 = vperm.slane %v2262_v37, %v4973_v39  ;;  %v2279_v41 = vrot.slane %v2272_v34, 4 }
 0x78f   : > { %v2250_v42 = vsel %vm1340_vm1, %v2249_v35, %v2232_v17 }
 0x790   : > { %v2256_v43 = vperm.slane %v2250_v42, %v4973_v39  ;;  %v2275_v44 = vrot.slane %v2260_v38, 4  ;;  %v2277_v45 = vrot.slane %v2268_v40, 4  ;;  %v2280_v46 = vsel %vm1340_vm1, 0.0, %v2279_v41 }
 0x791   : > { %v2292_v47 = vsel %vm1340_vm1, %v2279_v41, %v2268_v40  ;;  %v2297_v48 = vrot.slane %v2280_v46, 4 }
 0x792   : > { %v2273_v49 = vrot.slane %v2256_v43, 4  ;;  %v2276_v50 = vsel %vm1340_vm1, 0.0, %v2275_v44  ;;  %v2278_v10 = vsel %vm1340_vm1, 0.0, %v2277_v45  ;;  %v2281_v52 = vsel %vm1340_vm1, %v2275_v44, %v2256_v43 }
 0x793   : > { %v2285_v54 = vperm.slane %v2281_v52, %v4964_v26  ;;  %v2286_v55 = vrot.slane %v2276_v50, 4  ;;  %v2296_v14 = vperm.slane %v2292_v47, %v4964_v26  ;;  %v2298_v56 = vsel %vm1340_vm1, %v2297_v48, %v2278_v10 }
 0x794   : > { %v2274_v15 = vsel %vm1340_vm1, 0.0, %v2273_v49  ;;  %v2302_v57 = vperm.slane %v2298_v56, %v4964_v26 }
 0x795   : > { %v2287_v58 = vsel %vm1340_vm1, %v2286_v55, %v2274_v15  ;;  %v2305_v59 = vrot.slane %v2285_v54, 4  ;;  %v2317_v60 = vrot.slane %v2296_v14, 4 }
 0x796   : > { %v2291_v61 = vperm.slane %v2287_v58, %v4964_v26  ;;  %v2315_v62 = vrot.slane %v2302_v57, 4 }
 0x797   : > { %v2318_v18 = vsel %vm1340_vm1, %v2302_v57, %v2317_v60 }
 0x798   : > { %v2316_v63 = vsel %vm1340_vm1, %v2315_v62, %v2296_v14  ;;  %v2306_v0 = vsel %vm1340_vm1, %v2291_v61, %v2305_v59  ;;  %v2326_v1 = vperm.slane %v2318_v18, %v4973_v39  ;;  %v2303_v2 = vrot.slane %v2291_v61, 4  ;;  %v2457_v59 = vpop.permute.xlu0 %2456 }
 0x799   : > { %v2314_v3 = vperm.slane %v2306_v0, %v4973_v39  ;;  %v2322_v5 = vperm.slane %v2316_v63, %v4973_v39  ;;  %v2479_v63 = vrot.slane %v2457_v59, 4 }
 0x79a   : > { %v2331_v6 = vrot.slane %v2326_v1, 4  ;;  %v2304_v7 = vsel %vm1340_vm1, %v2303_v2, %v2285_v54 }
 0x79b   : > { %v2310_v8 = vperm.slane %v2304_v7, %v4973_v39  ;;  %v2327_v9 = vrot.slane %v2322_v5, 4  ;;  %v2333_v11 = vrot.slane %v2314_v3, 4 }
 0x79c   : > { %v2332_v12 = vsel %vm1340_vm1, %v2331_v6, %v2314_v3 }
 0x79d   : > { %v2577_v13 = vpack.c.bf16 %v2332_v12, %v2332_v12  ;;  %v2328_v20 = vsel %vm1340_vm1, %v2327_v9, %v2310_v8  ;;  %v2334_v16 = vsel %vm1340_vm1, %v2326_v1, %v2333_v11  ;;  %v2329_v17 = vrot.slane %v2310_v8, 4 }
 0x79e   : > { %v2575_v19 = vpack.c.bf16 %v2328_v20, %v2328_v20  ;;  %v2578_v21 = vpack.c.bf16 %v2334_v16, %v2334_v16 }
 0x79f   : > { %3505 = vmatmul.msk.bf16.vlgmr.msra.gmra.mxu1 %vm1698_vm2, %v2577_v13  ;;  %v2330_v4 = vsel %vm1340_vm1, %v2322_v5, %v2329_v17  ;;  %v2467_v5 = vrot.slane %v5265_v33, 4 }
 0x7a0   : > { %3503 = vmatmul.msk.bf16.vlgmr.msrb.gmra.mxu3 %vm1698_vm2, %v2575_v19  ;;  %3506 = vmatmul.msk.bf16.vlgmr.msra.gmra.mxu2 %vm1698_vm2, %v2578_v21  ;;  %v2576_v22 = vpack.c.bf16 %v2330_v4, %v2330_v4  ;;  %v2463_v18 = vpop.permute.xlu0 %2462 }
 0x7a1   : > { %v2477_v0 = vrot.slane %v2463_v18, 4  ;;  %v2480_v1 = vsel %vm1340_vm1, %v2463_v18, %v2479_v63 }
 0x7a2   : > { %3504 = vmatmul.msk.bf16.vlgmr.msra.gmra.mxu0 %vm1698_vm2, %v2576_v22  ;;  %v2488_v3 = vperm.slane %v2480_v1, %v4964_v26 }
 0x7a3   : > { %v2478_v2 = vsel %vm1340_vm1, %v2477_v0, %v2457_v59 }
 0x7a4   : > { %v2484_v6 = vperm.slane %v2478_v2, %v4964_v26  ;;  %v2501_v11 = vrot.slane %v2488_v3, 4 }
 0x7a6   : > { %v2489_v20 = vrot.slane %v2484_v6, 4 }
 0x81c   : > { %v2636_v23 = vpop.f32.mrf.mxu1 }
 0x81d   : > { %v2637_v37 = vadd.f32 %v2636_v23, %v1224_v27 }
 0x81f   : > { %v2617_v25 = vpop.f32.mrf.mxu0  ;;  %v2665_v41 = vsel %vm1698_vm2, %v2637_v37, -inf }
 0x820   : > { %v2618_v42 = vadd.f32 %v2617_v25, %v1224_v27 }
 0x822   : > { %v2662_v43 = vsel %vm1698_vm2, %v2618_v42, -inf }
 0x823   : > { %v2598_v28 = vpop.f32.mrf.mxu3  ;;  %v2655_v29 = vpop.f32.mrf.mxu2 }
 0x824   : > { %v2599_v30 = vadd.f32 %v2598_v28, %v1224_v27  ;;  %v2638_v31 = vpop.f32.mrf.mxu1  ;;  %v2656_v32 = vadd.f32 %v2655_v29, %v1224_v27 }
 0x826   : > { %v2668_v34 = vsel %vm1698_vm2, %v2656_v32, -inf  ;;  %v2659_v35 = vsel %vm1698_vm2, %v2599_v30, -inf }
 0x827   : > { %2669 = vmax.xlane.f32.xlu2 %v2668_v34  ;;  %v2619_v36 = vpop.f32.mrf.mxu0  ;;  %2660 = vmax.xlane.f32.xlu1 %v2659_v35 }
 0x82b   : > { %v2600_v38 = vpop.f32.mrf.mxu3  ;;  %v2657_v40 = vpop.f32.mrf.mxu2 }
 0x82f   : > { %2666 = vmax.xlane.f32.xlu1 %v2665_v41 }
 0x837   : > { %2663 = vmax.xlane.f32.xlu1 %v2662_v43 }
 0x850   : > { %2459 = vrot.lane.b32.xlu1 %v5265_v33, %s4450_s5  ;;  %s5556_s5 = sld [smem:[#allocation58_spill]] }
 0x89a   : > { %v2670_v44 = vpop.xlane.xlu2 %2669  ;;  %v2661_v45 = vpop.xlane.xlu1 %2660 }
 0x89b   : > { %v2674_v46 = vsub.f32 %v2656_v32, %v2670_v44  ;;  %v2671_v47 = vsub.f32 %v2599_v30, %v2661_v45 }
 0x89d   : > { %v2681_v48 = vmul.f32 1.442695, %v2674_v46  ;;  %v2675_v49 = vmul.f32 1.442695, %v2671_v47 }
 0x89f   : > { %3836 = vpow2.f32 %v2681_v48 }
 0x8a0   : > { %3838 = vpow2.f32 %v2675_v49 }
 0x8a2   : > { %v2667_v50 = vpop.xlane.xlu1 %2666 }
 0x8a3   : > { %v2673_v10 = vsub.f32 %v2637_v37, %v2667_v50 }
 0x8a5   : > { %v5313_v52 = vpop.eup %3836  ;;  %v2679_v53 = vmul.f32 1.442695, %v2673_v10 }
 0x8a6   : > { %v5315_v54 = vpop.eup %3838  ;;  %v2692_v55 = vsel %vm1698_vm2, %v5313_v52, 0.0 }
 0x8a7   : > { %3840 = vpow2.f32 %v2679_v53  ;;  %2693 = vadd.xlane.f32.xlu2 %v2692_v55  ;;  %v2683_v14 = vsel %vm1698_vm2, %v5315_v54, 0.0 }
 0x8a8   : > { %2684 = vadd.xlane.f32.xlu0 %v2683_v14 }
 0x8aa   : > { %v2664_v56 = vpop.xlane.xlu1 %2663 }
 0x8ab   : > { %v2672_v15 = vsub.f32 %v2618_v42, %v2664_v56 }
 0x8ad   : > { %v5321_v57 = vpop.eup %3840  ;;  %v2677_v58 = vmul.f32 1.442695, %v2672_v15 }
 0x8ae   : > { %v2689_v60 = vsel %vm1698_vm2, %v5321_v57, 0.0 }
 0x8af   : > { %3842 = vpow2.f32 %v2677_v58  ;;  %2690 = vadd.xlane.f32.xlu1 %v2689_v60 }
 0x8b5   : > { %v5325_v61 = vpop.eup %3842 }
 0x8b6   : > { %v2686_v62 = vsel %vm1698_vm2, %v5325_v61, 0.0 }
 0x8b7   : > { %2687 = vadd.xlane.f32.xlu2 %v2686_v62 }
 0x8c2   : > { %v2460_v7 = vpop.permute.xlu1 %2459 }
 0x8c3   : > { %v2465_v8 = vrot.slane %v2460_v7, 4  ;;  %v2468_v9 = vsel %vm1340_vm1, %v2460_v7, %v2467_v5 }
 0x8c4   : > { %v2476_v12 = vperm.slane %v2468_v9, %v4964_v26 }
 0x8c5   : > { %v2466_v13 = vsel %vm1340_vm1, %v2465_v8, %v5265_v33 }
 0x8c6   : > { %v2472_v16 = vperm.slane %v2466_v13, %v4964_v26  ;;  %v2502_v17 = vsel %vm1340_vm1, %v2501_v11, %v2476_v12  ;;  %v2503_v19 = vrot.slane %v2476_v12, 4 }
 0x8c7   : > { %v2508_v21 = vperm.slane %v2502_v17, %v4973_v39 }
 0x8c8   : > { %v2490_v4 = vsel %vm1340_vm1, %v2489_v20, %v2472_v16  ;;  %v2491_v22 = vrot.slane %v2472_v16, 4  ;;  %v2504_v23 = vsel %vm1340_vm1, %v2488_v3, %v2503_v19 }
 0x8c9   : > { %v2496_v25 = vperm.slane %v2490_v4, %v4973_v39  ;;  %v2512_v27 = vperm.slane %v2504_v23, %v4973_v39  ;;  %v2517_v29 = vrot.slane %v2508_v21, 4 }
 0x8ca   : > { %v2492_v28 = vsel %vm1340_vm1, %v2484_v6, %v2491_v22 }
 0x8cb   : > { %v2500_v33 = vperm.slane %v2492_v28, %v4973_v39  ;;  %v2519_v30 = vrot.slane %v2512_v27, 4  ;;  %v2513_v31 = vrot.slane %v2496_v25, 4  ;;  %v2518_v40 = vsel %vm1340_vm1, 0.0, %v2517_v29 }
 0x8cd   : > { %v2515_v32 = vrot.slane %v2500_v33, 4  ;;  %v2520_v34 = vsel %vm1340_vm1, 0.0, %v2519_v30  ;;  %v2532_v35 = vsel %vm1340_vm1, %v2519_v30, %v2508_v21  ;;  %v2514_v46 = vsel %vm1340_vm1, 0.0, %v2513_v31 }
 0x8ce   : > { %v2536_v36 = vperm.slane %v2532_v35, %v4964_v26  ;;  %v2537_v37 = vrot.slane %v2520_v34, 4 }
 0x8cf   : > { %v2516_v38 = vsel %vm1340_vm1, 0.0, %v2515_v32  ;;  %v2521_v41 = vsel %vm1340_vm1, %v2515_v32, %v2496_v25 }
 0x8d0   : > { %v2526_v42 = vrot.slane %v2516_v38, 4  ;;  %v2538_v43 = vsel %vm1340_vm1, %v2537_v37, %v2518_v40  ;;  %v2557_v44 = vrot.slane %v2536_v36, 4  ;;  %v2525_v45 = vperm.slane %v2521_v41, %v4964_v26 }
 0x8d1   : > { %v2542_v47 = vperm.slane %v2538_v43, %v4964_v26 }
 0x8d2   : > { %v2527_v48 = vsel %vm1340_vm1, %v2526_v42, %v2514_v46  ;;  %v2545_v49 = vrot.slane %v2525_v45, 4 }
 0x8d3   : > { %v2555_v50 = vrot.slane %v2542_v47, 4  ;;  %v2531_v10 = vperm.slane %v2527_v48, %v4964_v26  ;;  %v2558_v53 = vsel %vm1340_vm1, %v2542_v47, %v2557_v44 }
 0x8d4   : > { %v2566_v55 = vperm.slane %v2558_v53, %v4973_v39 }
 0x8d5   : > { %v2546_v14 = vsel %vm1340_vm1, %v2531_v10, %v2545_v49  ;;  %v2543_v56 = vrot.slane %v2531_v10, 4  ;;  %v2556_v15 = vsel %vm1340_vm1, %v2555_v50, %v2536_v36 }
 0x8d6   : > { %v2554_v58 = vperm.slane %v2546_v14, %v4973_v39  ;;  %v2571_v59 = vrot.slane %v2566_v55, 4  ;;  %v2562_v60 = vperm.slane %v2556_v15, %v4973_v39 }
 0x8d7   : > { %v2544_v62 = vsel %vm1340_vm1, %v2543_v56, %v2525_v45 }
 0x8d8   : > { %v2572_v18 = vsel %vm1340_vm1, %v2571_v59, %v2554_v58  ;;  %v2550_v63 = vperm.slane %v2544_v62, %v4973_v39  ;;  %v2567_v0 = vrot.slane %v2562_v60, 4  ;;  %v2573_v1 = vrot.slane %v2554_v58, 4 }
 0x8d9   : > { %v2709_v2 = vpack.c.bf16 %v2572_v18, %v2572_v18 }
 0x8da   : > { %v2568_v3 = vsel %vm1340_vm1, %v2567_v0, %v2550_v63  ;;  %v2574_v5 = vsel %vm1340_vm1, %v2566_v55, %v2573_v1  ;;  %v2569_v6 = vrot.slane %v2550_v63, 4 }
 0x8db   : > { %v2753_v7 = vsel %vm1830_vm3, %v2709_v2, 0  ;;  %v2707_v8 = vpack.c.bf16 %v2568_v3, %v2568_v3  ;;  %v2710_v9 = vpack.c.bf16 %v2574_v5, %v2574_v5 }
 0x8dc   : > { %2762 = vmatpush.bf16.msrb.mxu1 %v2753_v7  ;;  %v2570_v11 = vsel %vm1340_vm1, %v2562_v60, %v2569_v6 }
 0x8dd   : > { %v2715_v12 = vsel %vm1830_vm3, %v2707_v8, 0  ;;  %v2772_v13 = vsel %vm1830_vm3, %v2710_v9, 0  ;;  %v2708_v20 = vpack.c.bf16 %v2570_v11, %v2570_v11 }
 0x8de   : > { %2724 = vmatpush.bf16.msra.mxu3 %v2715_v12  ;;  %2781 = vmatpush.bf16.msrb.mxu2 %v2772_v13 }
 0x8df   : > { %v2734_v16 = vsel %vm1830_vm3, %v2708_v20, 0 }
 0x8e0   : > { %2743 = vmatpush.bf16.msrb.mxu0 %v2734_v16 }
 0x91a   : > { %v2694_v17 = vpop.xlane.xlu2 %2693 }
 0x91b   : > { %3844 = vrcp.f32 %v2694_v17  ;;  %v2685_v19 = vpop.xlane.xlu0 %2684 }
 0x91c   : > { %3846 = vrcp.f32 %v2685_v19 }
 0x921   : > { %v3845_v21 = vpop.eup %3844 }
 0x922   : > { %v3847_v4 = vpop.eup %3846  ;;  %v2702_v22 = vmul.f32 %v3845_v21, %v5313_v52  ;;  %v2691_v23 = vpop.xlane.xlu1 %2690 }
 0x923   : > { %v2699_v25 = vmul.f32 %v3847_v4, %v5315_v54  ;;  %3848 = vrcp.f32 %v2691_v23 }
 0x924   : > { %v2706_v27 = vpack.c.bf16 %v2702_v22, %v2702_v22 }
 0x925   : > { %v2703_v28 = vpack.c.bf16 %v2699_v25, %v2699_v25 }
 0x926   : > { %3510 = vmatmul.msk.bf16.vlgmr.msrb.gmra.mxu2 %vm1698_vm2, %v2706_v27 }
 0x927   : > { %3507 = vmatmul.msk.bf16.vlgmr.msra.gmra.mxu3 %vm1698_vm2, %v2703_v28 }
 0x929   : > { %v3849_v33 = vpop.eup %3848 }
 0x92a   : > { %v2701_v29 = vmul.f32 %v3849_v33, %v5321_v57  ;;  %v2688_v30 = vpop.xlane.xlu2 %2687 }
 0x92b   : > { %3850 = vrcp.f32 %v2688_v30 }
 0x92c   : > { %v2705_v31 = vpack.c.bf16 %v2701_v29, %v2701_v29 }
 0x92e   : > { %3509 = vmatmul.msk.bf16.vlgmr.msrb.gmra.mxu1 %vm1698_vm2, %v2705_v31 }
 0x931   : > { %v3851_v32 = vpop.eup %3850 }
 0x932   : > { %v2700_v52 = vmul.f32 %v3851_v32, %v5325_v61 }
 0x934   : > { %v2704_v34 = vpack.c.bf16 %v2700_v52, %v2700_v52 }
 0x936   : > { %3508 = vmatmul.msk.bf16.vlgmr.msrb.gmra.mxu0 %vm1698_vm2, %v2704_v34 }
 0x9a9   : > { %v2783_v54 = vpop.f32.mrf.mxu2 }
 0x9aa   : > { %v2726_v35 = vpop.f32.mrf.mxu3  ;;  %v2799_v43 = vrot.slane %v2783_v54, 4 }
 0x9ab   : > { %v2764_v36 = vpop.f32.mrf.mxu1  ;;  %v2789_v37 = vrot.slane %v2726_v35, 4 }
 0x9ac   : > { %v2787_v38 = vrot.slane %v2764_v36, 4 }
 0x9ad   : > { %v2790_v57 = vsel %vm1340_vm1, %v2764_v36, %v2789_v37 }
 0x9ae   : > { %v2788_v40 = vsel %vm1340_vm1, %v2787_v38, %v2726_v35  ;;  %v2798_v45 = vperm.slane %v2790_v57, %v4964_v26 }
 0x9af   : > { %v2794_v41 = vperm.slane %v2788_v40, %v4964_v26 }
 0x9b0   : > { %v2825_v53 = vrot.slane %v2798_v45, 4 }
 0x9b1   : > { %v2785_v42 = vpop.f32.mrf.mxu2  ;;  %v2813_v49 = vrot.slane %v2794_v41, 4 }
 0x9b2   : > { %v2728_v44 = vpop.f32.mrf.mxu3 }
 0x9b3   : > { %v2745_v61 = vpop.f32.mrf.mxu0  ;;  %v2766_v46 = vpop.f32.mrf.mxu1 }
 0x9b4   : > { %v2800_v47 = vsel %vm1340_vm1, %v2799_v43, %v2745_v61  ;;  %v2801_v48 = vrot.slane %v2745_v61, 4  ;;  %v3565_v43 = vld [vmem:[#allocation16 + $0x8] sm:$0xff] }
 0x9b5   : > { %v2806_v50 = vperm.slane %v2800_v47, %v4964_v26  ;;  %2942 = vmatpush.bf16.msrb.mxu3 %v3565_v43 }
 0x9b6   : > { %v2802_v10 = vsel %vm1340_vm1, %v2783_v54, %v2801_v48 }
 0x9b7   : > { %v2810_v55 = vperm.slane %v2802_v10, %v4964_v26  ;;  %v2811_v14 = vrot.slane %v2806_v50, 4  ;;  %v2814_v56 = vsel %vm1340_vm1, %v2806_v50, %v2813_v49  ;;  %v3809_v50 = vld [vmem:[%s5553_s9] ss:$0 sm:$0xff]  ;;  %s4326_s9 = scalar_lea.hbm %s5556_s5, 16 }
 0x9b8   : > { %v2822_v15 = vperm.slane %v2814_v56, %v4973_v39 }
 0x9b9   : > { %v2812_v58 = vsel %vm1340_vm1, %v2811_v14, %v2794_v41  ;;  %v2823_v59 = vrot.slane %v2810_v55, 4  ;;  %v2826_v60 = vsel %vm1340_vm1, %v2810_v55, %v2825_v53 }
 0x9ba   : > { %v2818_v62 = vperm.slane %v2812_v58, %v4973_v39  ;;  %v2834_v18 = vperm.slane %v2826_v60, %v4973_v39  ;;  %v2837_v63 = vrot.slane %v2822_v15, 4 }
 0x9bb   : > { %v2824_v0 = vsel %vm1340_vm1, %v2823_v59, %v2798_v45  ;;  %v2747_v1 = vpop.f32.mrf.mxu0 }
 0x9bc   : > { %v2830_v2 = vperm.slane %v2824_v0, %v4973_v39  ;;  %v2835_v3 = vrot.slane %v2818_v62, 4  ;;  %v2838_v5 = vsel %vm1340_vm1, 0.0, %v2837_v63  ;;  %v2841_v6 = vrot.slane %v2834_v18, 4  ;;  %v3567_v18 = vld [vmem:[#allocation23 + $0x8] sm:$0xff]  ;;  %v3571_v0 = vld [vmem:[%s5554_s3 + $0x18] sm:$0xff] }
 0x9bd   : > { %v2843_v7 = vsel %vm1340_vm1, %v2837_v63, %v2818_v62  ;;  %v2848_v8 = vrot.slane %v2838_v5, 4  ;;  %3012 = vmatpush.bf16.msra.mxu0 %v3567_v18  ;;  %v3566_v63 = vld [vmem:[#allocation23] sm:$0xff]  ;;  %3065 = vmatpush.bf16.msra.mxu1 %v3571_v0 }
 0x9be   : > { %v2836_v9 = vsel %vm1340_vm1, 0.0, %v2835_v3  ;;  %v2839_v11 = vrot.slane %v2830_v2, 4  ;;  %v2842_v12 = vsel %vm1340_vm1, 0.0, %v2841_v6  ;;  %v2847_v13 = vperm.slane %v2843_v7, %v4964_v26 }
 0x9bf   : > { %v2859_v20 = vrot.slane %v2842_v12, 4  ;;  %v2849_v16 = vsel %vm1340_vm1, %v2848_v8, %v2836_v9  ;;  %v2854_v17 = vsel %vm1340_vm1, %v2841_v6, %v2830_v2  ;;  %v3570_v2 = vld [vmem:[%s5554_s3 + $0x10] sm:$0xff] }
 0x9c0   : > { %v2840_v19 = vsel %vm1340_vm1, 0.0, %v2839_v11  ;;  %v2853_v21 = vperm.slane %v2849_v16, %v4964_v26  ;;  %v2858_v4 = vperm.slane %v2854_v17, %v4964_v26  ;;  %v2867_v22 = vrot.slane %v2847_v13, 4  ;;  %v3810_v12 = vld [vmem:[#allocation17] ss:$0 sm:$0xff] }
 0x9c1   : > { %v2860_v23 = vsel %vm1340_vm1, %v2859_v20, %v2840_v19  ;;  %3013 = vmatpush.bf16.msra.mxu0 %v3566_v63  ;;  %3066 = vmatpush.bf16.msra.mxu1 %v3570_v2  ;;  %v3811_v20 = vld [vmem:[#allocation19] ss:$0 sm:$0xff] }
 0x9c2   : > { %v2864_v25 = vperm.slane %v2860_v23, %v4964_v26  ;;  %v2879_v27 = vrot.slane %v2858_v4, 4  ;;  %v2865_v28 = vrot.slane %v2853_v21, 4  ;;  %v2868_v33 = vsel %vm1340_vm1, %v2853_v21, %v2867_v22  ;;  %v3568_v22 = vld [vmem:[%s5554_s3] sm:$0xff]  ;;  %v3812_v23 = vld [vmem:[#allocation25] ss:$0 sm:$0xff] }
 0x9c3   : > { %v2876_v54 = vperm.slane %v2868_v33, %v4973_v39 }
 0x9c4   : > { %v2880_v29 = vsel %vm1340_vm1, %v2864_v25, %v2879_v27  ;;  %v2866_v30 = vsel %vm1340_vm1, %v2865_v28, %v2847_v13  ;;  %v2877_v31 = vrot.slane %v2864_v25, 4 }
 0x9c5   : > { %v2888_v32 = vperm.slane %v2880_v29, %v4973_v39  ;;  %v2872_v52 = vperm.slane %v2866_v30, %v4973_v39  ;;  %v2895_v41 = vrot.slane %v2876_v54, 4  ;;  %v3813_v30 = vld [vmem:[%s5555_s26] ss:$0 sm:$0xff] }
 0x9c6   : > { %v2878_v34 = vsel %vm1340_vm1, %v2877_v31, %v2858_v4  ;;  %v3569_v4 = vld [vmem:[%s5554_s3 + $0x8] sm:$0xff] }
 0x9c7   : > { %v2893_v35 = vrot.slane %v2888_v32, 4  ;;  %v2884_v26 = vperm.slane %v2878_v34, %v4973_v39  ;;  %v2891_v36 = vrot.slane %v2872_v52, 4  ;;  %v2896_v42 = vsel %vm1340_vm1, %v2888_v32, %v2895_v41  ;;  %v3564_v39 = vld [vmem:[#allocation16] sm:$0xff]  ;;  %3067 = vmatpush.bf16.msra.mxu1 %v3569_v4 }
 0x9c8   : > { %2943 = vmatpush.bf16.msrb.mxu3 %v3564_v39 }
 0x9c9   : > { %v2894_v37 = vsel %vm1340_vm1, %v2893_v35, %v2876_v54  ;;  %v2889_v38 = vrot.slane %v2884_v26, 4  ;;  %v2892_v40 = vsel %vm1340_vm1, %v2884_v26, %v2891_v36 }
 0x9ca   : > { %2902 = vrot.lane.b32.xlu0 %v2894_v37, %s4454_s17  ;;  %2898 = vrot.lane.b32.xlu2 %v2892_v40, %s4455_s0  ;;  %s1207_s0 = scalar_lea.vmem [#allocation26], %s3413_s11 }
 0x9cb   : > { %v2890_v57 = vsel %vm1340_vm1, %v2889_v38, %v2872_v52  ;;  %3068 = vmatpush.bf16.msra.mxu1 %v3568_v22  ;;  %s3121_s4 = sshll.u32 %s1207_s0, 4  ;;  %s3122_s4 = int_to_ptr.vmem [resolvable:$true] %s3121_s4 }
 0x9d2   : > { %2906 = vrot.lane.b32.xlu2 %v2896_v42, %s4453_s12  ;;  %s3547_s12 = sshll.u32 %s4641_s23, 3  ;;  %s3109_s23 = scalar_lea.sflag [#allocation4], %s4902_s2 }
 0x9d3   : > { %s3119_s17 = scalar_lea.hbm %s5556_s5, %s3547_s12 }
 0x9d4   : > { %s3123_s8 = sshll.u32 %s3119_s17, 4  ;;  %s3124_s8 = int_to_ptr.hbm [resolvable:$true] %s3123_s8 }
 0x9d5   : > { %s4320_s6 = sshra.s32 %s3124_s8, 4  ;;  %s4321_s6 = int_to_ptr.hbm [resolvable:$true] %s4320_s6 }
 0x9d6   : > { %s4322_s7 = scalar_lea.hbm %s4321_s6, 8  ;;  %p4327_p2 = scmp.lt.s32.totalorder %s4321_s6, %s5556_s5 }
 0x9d7   : > { %p4323_p5 = scmp.ne.s32.totalorder %s4321_s6, %s4322_s7  ;;  %p4328_p6 = scmp.lt.s32.totalorder %s4326_s9, %s4322_s7 }
 0x9d9   : > { %p4324_p10 = pnand %p4323_p5, %p4877_p0  ;;  %p4329_p8 = por %p4328_p6, %p4327_p2 }
 0x9db   : > { %p4325_p13 = pneg %p4324_p10 }
 0x9dd   : > { %p4330_p4 = pnand %p4329_p8, %p4325_p13 }
 0xa24   : > { %v2899_v44 = vpop.permute.xlu2 %2898 }
 0xa25   : > { %v2909_v45 = vsel %vm1698_vm2, %v2890_v57, %v2899_v44 }
 0xa2c   : > { %v2907_v46 = vpop.permute.xlu2 %2906 }
 0xa3c   : > { %v2903_v61 = vpop.permute.xlu0 %2902 }
 0xa3d   : > { %v2910_v47 = vsel %vm2027_vm4, %v2909_v45, %v2903_v61 }
 0xa3e   : > { %v2911_v48 = vsel %vm2029_vm5, %v2910_v47, %v2907_v46  ;;  %v3814_v46 = vld [vmem:[#allocation20] ss:$0 sm:$0xff] }
 0xa3f   : > { %v2912_v49 = vpack.c.bf16 %v2911_v48, %v2911_v48 }
 0xa41   : > { %3519 = vmatmul.msk.bf16.vlgmr.msrb.gmra.mxu3 %vm1246_vm0, %v2912_v49 }
 0xac4   : > { %v2945_v10 = vpop.f32.mrf.mxu3 }
 0xac5   : > { %v2946_v53 = vadd.f32 %v3809_v50, %v2945_v10 }
 0xac7   : > { %v2949_v55 = vadd.f32 %v2946_v53, %v5200_v51 }
 0xac9   : > { %v2952_v14 = vsel %vm1246_vm0, %v2949_v55, 0.0 }
 0xaca   : > { %2953 = vadd.xlane.f32.xlu1 %v2952_v14 }
 0xacc   : > { %v2947_v56 = vpop.f32.mrf.mxu3 }
 0xb3d   : > { %v2954_v15 = vpop.xlane.xlu1 %2953 }
 0xb3e   : > { %v2955_v58 = vmul.f32 %v2954_v15, %v5189_v24 }
 0xb40   : > { %v2956_v59 = vsub.f32 %v2949_v55, %v2955_v58 }
 0xb42   : > { %v2957_v60 = vmul.f32 %v2956_v59, %v2956_v59 }
 0xb44   : > { %v2958_v62 = vsel %vm1246_vm0, %v2957_v60, 0.0 }
 0xb45   : > { %2959 = vadd.xlane.f32.xlu2 %v2958_v62 }
 0xbb8   : > { %v2960_v1 = vpop.xlane.xlu2 %2959 }
 0xbb9   : > { %v2961_v51 = vmul.f32 %v2960_v1, %v5189_v24 }
 0xbbb   : > { %v2962_v3 = vadd.f32 1e-06, %v2961_v51 }
 0xbbd   : > { %3852 = vrsqrt.f32 %v2962_v3  ;;  %vm2969_vm11 = vweird.f32 %v2962_v3 }
 0xbc3   : > { %v3853_v5 = vpop.eup %3852 }
 0xbc4   : > { %v2964_v6 = vmul.f32 %v3853_v5, %v2962_v3  ;;  %vm2970_vm10 = vweird.f32 %v3853_v5 }
 0xbc5   : > { %vm2971_vm12 = vmor %vm2969_vm11, %vm2970_vm10 }
 0xbc6   : > { %v2965_v7 = vmul.f32 %v3853_v5, %v2964_v6 }
 0xbc8   : > { %v2966_v8 = vmul.f32 0.5, %v2965_v7 }
 0xbca   : > { %v2967_v9 = vsub.f32 1.5, %v2966_v8 }
 0xbcc   : > { %v2968_v11 = vmul.f32 %v3853_v5, %v2967_v9 }
 0xbce   : > { %v2972_v13 = vsel %vm2971_vm12, %v3853_v5, %v2968_v11 }
 0xbcf   : > { %v2973_v16 = vmul.f32 %v2972_v13, %v2956_v59 }
 0xbd1   : > { %v2977_v17 = vmul.f32 %v3810_v12, %v2973_v16 }
 0xbd3   : > { %v2981_v19 = vadd.f32 %v3811_v20, %v2977_v17 }
 0xbd5   : > { %v2982_v21 = vpack.c.bf16 %v2981_v19, %v2981_v19 }
 0xbd7   : > { %3528 = vmatmul.msk.bf16.vlgmr.msra.gmra.mxu0 %vm1246_vm0, %v2982_v21 }
 0xc54   : > { %v3015_v25 = vpop.f32.mrf.mxu0 }
 0xc55   : > { %v3016_v27 = vadd.f32 %v3812_v23, %v3015_v25 }
 0xc57   : > { %v3019_v28 = vmax.f32 %v3016_v27, 0.0 }
 0xc59   : > { %v3020_v33 = vpack.c.bf16 %v3019_v28, %v3019_v28 }
 0xc5b   : > { %3545 = vmatmul.msk.bf16.vlgmr.msra.gmra.mxu1 %vm3057_vm13, %v3020_v33 }
 0xc5c   : > { %v3017_v29 = vpop.f32.mrf.mxu0 }
 0xcd8   : > { %v3070_v31 = vpop.f32.mrf.mxu1 }
 0xcd9   : > { %v3071_v32 = vadd.f32 %v3813_v30, %v3070_v31 }
 0xcdb   : > { %v3074_v52 = vadd.f32 %v3071_v32, %v2981_v19 }
 0xcdd   : > { %v3077_v34 = vsel %vm1246_vm0, %v3074_v52, 0.0 }
 0xcde   : > { %3078 = vadd.xlane.f32.xlu0 %v3077_v34 }
 0xce0   : > { %v3072_v54 = vpop.f32.mrf.mxu1 }
 0xd51   : > { %v3079_v35 = vpop.xlane.xlu0 %3078 }
 0xd52   : > { %v3080_v26 = vmul.f32 %v3079_v35, %v5189_v24 }
 0xd54   : > { %v3081_v36 = vsub.f32 %v3074_v52, %v3080_v26 }
 0xd56   : > { %v3082_v37 = vmul.f32 %v3081_v36, %v3081_v36 }
 0xd58   : > { %v3083_v38 = vsel %vm1246_vm0, %v3082_v37, 0.0 }
 0xd59   : > { %3084 = vadd.xlane.f32.xlu1 %v3083_v38 }
 0xdcc   : > { %v3085_v40 = vpop.xlane.xlu1 %3084 }
 0xdcd   : > { %v3086_v57 = vmul.f32 %v3085_v40, %v5189_v24  ;;  %v3815_v24 = vld [vmem:[#allocation22] ss:$0 sm:$0xff] }
 0xdcf   : > { %v3087_v41 = vadd.f32 1e-06, %v3086_v57 }
 0xdd1   : > { %3854 = vrsqrt.f32 %v3087_v41  ;;  %vm3094_vm15 = vweird.f32 %v3087_v41 }
 0xdd7   : > { %v3855_v42 = vpop.eup %3854 }
 0xdd8   : > { %v3089_v43 = vmul.f32 %v3855_v42, %v3087_v41  ;;  %vm3095_vm14 = vweird.f32 %v3855_v42 }
 0xdd9   : > { %vm3096_vm1 = vmor %vm3094_vm15, %vm3095_vm14 }
 0xdda   : > { %v3090_v39 = vmul.f32 %v3855_v42, %v3089_v43 }
 0xddc   : > { %v3091_v44 = vmul.f32 0.5, %v3090_v39 }
 0xdde   : > { %v3092_v45 = vsub.f32 1.5, %v3091_v44 }
 0xde0   : > { %v3093_v61 = vmul.f32 %v3855_v42, %v3092_v45 }
 0xde2   : > { %v3097_v47 = vsel %vm3096_vm1, %v3855_v42, %v3093_v61 }
 0xde3   : > { %v3098_v48 = vmul.f32 %v3097_v47, %v3081_v36 }
 0xde5   : > { %v3102_v49 = vmul.f32 %v3814_v46, %v3098_v48 }
 0xde7   : > { %v3106_v50 = vadd.f32 %v3815_v24, %v3102_v49 }
 0xde9   : > { %3107 = vst.msk [vmem:[%s1207_s0] sm:$0xff] %vm1246_vm0, %v3106_v50 }
 0xdea   : > { %4333 = shalt.err (!%p4330_p4)
}
 0xdeb   : > { %3630 = dma.vmem_to_hbm [thread:$0]  (%p4877_p0), %s3122_s4, 128, %s3124_s8, %s3109_s23  }
 0xdec PF: > { %s3135_s2 = sand.u32 1, %s4388_s15   ;;  %p5557_p7 = scmp.ne.s32.totalorder %s5525_s25, 0 }
 0xded   : > { %p5558_p9 = scmp.ge.s32.totalorder %s4400_s22, 2  ;;  %s3136_s11 = scalar_lea.sflag [#allocation4], %s3135_s2 }
 0xdef   : > { %p3680_p11 = pnand %p5558_p9, %p5557_p7 }
 0xdf1   : > { %p3681_p12 = pneg %p3680_p11 }
 0xdf3   : > { %4383 = dma.done.wait (%p3681_p12), %s3136_s11, 128  }
 0xdf4   : > { %4385 = vsyncadd (%p3681_p12), %s3136_s11, 4294967168  ;;  %p81_p1 = scmp.ge.s32.totalorder %s4851_s21, 4   ;;  %s5559_s15 = smov %s4392_s16 }
 0xdf5   : > { %s5560_s16 = smov %s4396_s18  ;;  %s5561_s18 = smov %s4862_s10 }
 0xdf6   : > { %s5562_s22 = smov %s4851_s21  ;;  %83 = sbr.rel (!%p81_p1) target bundleno = 70 (0x46), region = 280 }
 0xdfb   :  { %3142 = vsyncpa [#allocation3], 1 }
 0xdfc   :  { %3144 = vsyncpa [#allocation3 + $0x1], 1 }
 0xdfd   :  { %3145 = vsyncpa [#allocation6], 1 }
 0xdfe   :  { %3146 = vsyncpa [#allocation9], 1 }
 0xdff   :  { %3147 = vsyncpa [#allocation12], 1 }
 0xe00   :  { %3148 = vsyncpa [#allocation15], 1 }
 0xe01   :  { %3149 = vsyncpa [#allocation18], 1 }
 0xe02   :  { %3150 = vsyncpa [#allocation21], 1 }
 0xe03   :  { %3151 = vsyncpa [#allocation24], 1 }
 0xe04   :  { %3152 = vsyncpa [#allocation4], 1 }
 0xe05   :  { %3154 = vsyncpa [#allocation4 + $0x1], 1 }

</bundles_post_ra>
